<compile_context>
chip_gen: v6e
topology: v6e:2x2x1
jax: 0.10.0
libtpu: 0.0.40
codegen_flags: <defaults>
</compile_context>

<pallas_src>
import functools

import jax
import jax.numpy as jnp
from jax import lax
from jax.experimental import pallas as pl
from jax.experimental.pallas import tpu as pltpu

FP16_HUGE = 2.0 ** 15
LN_EPS = 1e-5  # torch.nn.LayerNorm default


def _layer_norm(x, gamma, beta):
    mean = jnp.mean(x, axis=-1, keepdims=True)
    var = jnp.mean((x - mean) ** 2, axis=-1, keepdims=True)
    return (x - mean) * lax.rsqrt(var + LN_EPS) * gamma + beta


def _itemsize(dt):
    return jnp.dtype(dt).itemsize


def _vmem_cap_bytes():
    # ~60% of physical VMEM leaves headroom for Mosaic internal scratch / spills
    # (≈38 MiB on v7x's 64 MiB/TC, ≈77 MiB on v5e/v6e's 128 MiB).
    try:
        return int(pltpu.get_tpu_info().vmem_capacity_bytes * 0.6)
    except Exception:  # non-TPU backend / interpret mode
        return 48 * 1024 * 1024


# --------------------------------------------------------------------------
# Kernel 1: triangle (pair) bias.
#   nb[b, h, q, k] = LayerNorm(pair_act)[b, q, k, :] @ feat_2d_weights[:, h]
# Tiled over query-row blocks; output block [H, tq*N] is lane-dense and already
# head-major, so the downstream [B, H, N, N] layout is a free reshape.
# --------------------------------------------------------------------------
def _pair_bias_kernel(x_ref, g_ref, b_ref, w_ref, out_ref, *, compute_dtype, precision):
    tq, k, c = x_ref.shape
    xn = _layer_norm(x_ref[...], g_ref[...], b_ref[...])                   # [tq, K, C] f32
    flat = xn.reshape(tq * k, c).astype(compute_dtype)                     # [tq*K, C]
    prod = jnp.dot(flat, w_ref[...], preferred_element_type=jnp.float32,
                   precision=precision)                                    # [tq*K, H]
    out_ref[...] = prod.T.astype(out_ref.dtype)                            # [H, tq*K]


# --------------------------------------------------------------------------
# Kernel 2: per-row gated multi-head attention with mask + triangle bias.
# One (batch, row) per grid step; query dimension tiled in-kernel.
# --------------------------------------------------------------------------
def _tri_attn_kernel(x_ref, mask_ref, nb_ref,
                     qg_ref, qb_ref,
                     qgw_ref, kvw_ref, gb_ref, ow_ref, ob_ref,
                     out_ref, xn_ref, *,
                     num_head, q_tile, gating, compute_dtype, exp_dtype, precision):
    n, c = x_ref.shape
    dh = c // num_head
    f32 = jnp.float32

    def mm(a, b):
        return jnp.dot(a, b, preferred_element_type=f32, precision=precision)

    # query_norm(pair_act) is shared by Q/K/V/gating; keep a casted copy in VMEM
    # scratch so query tiles can be re-sliced from a ref.
    x = _layer_norm(x_ref[...], qg_ref[...], qb_ref[...])                  # [N, C] f32
    xc = x.astype(compute_dtype)
    xn_ref[...] = xc

    bias = FP16_HUGE * (mask_ref[...] - 1.0)                               # [1, N] f32

    kvw = kvw_ref[...]                                                     # [C, 2C]
    qgw = qgw_ref[...]                                                     # [C, C(+C)]
    ow = ow_ref[...]                                                       # [H*dv, C]
    ob = ob_ref[...]                                                       # [1, C]
    if gating:
        gb = gb_ref[...]                                                   # [1, H*dv]

    # Fused K+V projection for the whole row: one [N,C]@[C,2C] MXU call.
    kv = mm(xc, kvw)                                                       # [N, 2C] f32
    # K is transposed ONCE per row (f32 transpose, then cast) so the inner logits
    # matmul is a plain [tq,dh]@[dh,N] with no per-(head,tile) relayout.
    k_t = jnp.transpose(kv[:, :c]).astype(compute_dtype)                   # [H*dh, N]
    v_all = kv[:, c:].astype(compute_dtype)                                # [N, H*dh]
    k_t_heads = [k_t[h * dh:(h + 1) * dh, :] for h in range(num_head)]     # hoisted
    v_heads = [v_all[:, h * dh:(h + 1) * dh] for h in range(num_head)]     # hoisted

    num_q_tiles = n // q_tile
    use_approx = jnp.dtype(compute_dtype) != jnp.dtype(f32)

    def q_tile_body(t, carry):
        q0 = pl.multiple_of(t * q_tile, q_tile)
        xq = xn_ref[pl.ds(q0, q_tile), :]                                  # [tq, C]
        # Fused Q(+gating) projection: one [tq,C]@[C,2C] MXU call
        # (key_scale folded into the Q half of the packed weight).
        qg_all = mm(xq, qgw)                                               # [tq, C(+C)] f32
        q_all = qg_all[:, :c].astype(compute_dtype)                        # [tq, H*dh]
        if gating:
            gate_all = jax.nn.sigmoid(qg_all[:, c:] + gb)                  # [tq, H*dv] f32

        pv_heads = []
        for h in range(num_head):                                          # static unroll
            q_h = q_all[:, h * dh:(h + 1) * dh]                            # [tq, dh]
            logits = mm(q_h, k_t_heads[h]) + bias + nb_ref[h, pl.ds(q0, q_tile), :]
            m = jnp.max(logits, axis=-1, keepdims=True)
            # exp in exp_dtype (bf16 on v6e/v7x halves EUP cost); sums/PV stay f32.
            p = jnp.exp((logits - m).astype(exp_dtype))
            l = jnp.sum(p.astype(f32), axis=-1, keepdims=True)
            pv = mm(p.astype(compute_dtype), v_heads[h])                   # [tq, dv] f32
            # Normalize after the PV matmul (a [tq,dv] tensor, not [tq,N]).
            if use_approx:
                pv = pv * pl.reciprocal(l, approx=True)                    # EUP slot
            else:
                pv = pv / l
            pv_heads.append(pv)

        pv_all = jnp.concatenate(pv_heads, axis=-1)                        # [tq, H*dv] f32
        if gating:
            pv_all = pv_all * gate_all
        # Fused output projection: one [tq,H*dv]@[H*dv,C] MXU call.
        out = mm(pv_all.astype(compute_dtype), ow) + ob                    # [tq, C]
        out_ref[pl.ds(q0, q_tile), :] = out.astype(out_ref.dtype)
        return carry

    lax.fori_loop(0, num_q_tiles, q_tile_body, 0)


# --------------------------------------------------------------------------
# Wrapper: parameter packing + pallas_call plumbing.
# --------------------------------------------------------------------------
def triangle_attention(pair_act, pair_mask, params, *, num_head, gating=True,
                       orientation='per_row', compute_dtype=jnp.bfloat16,
                       out_dtype=jnp.float32, bf16_exp=None,
                       q_tile=None, bias_row_tile=None):
    """TriangleAttention forward ('per_row' orientation)."""
    # TODO(synk): 'per_column' orientation not implemented; the reference PyTorch code
    # swaps axes (-1, -2) (channel/key) there, which appears to be a bug, so only the
    # 'per_row' math is reproduced here.
    assert orientation == 'per_row'
    B, N, N2, C = pair_act.shape
    assert N == N2 and pair_mask.shape == (B, N, N)
    H = num_head
    assert C % H == 0
    dh = C // H
    key_scale = dh ** -0.5
    f32 = jnp.float32
    pair_act = pair_act.astype(f32)
    pair_mask = pair_mask.astype(f32)

    is_f32 = jnp.dtype(compute_dtype) == jnp.dtype(f32)
    # f32 verification path runs MXU at HIGHEST precision so it detects structural bugs.
    precision = lax.Precision.HIGHEST if is_f32 else lax.Precision.DEFAULT
    # Triangle bias stored bf16 on the fast path: halves kernel-1 writeback and the
    # per-batch-resident VMEM footprint in kernel 2.
    nb_dtype = f32 if is_f32 else jnp.bfloat16
    # bf16 exp halves EUP cost on v6e/v7x; pass bf16_exp=False on v5e (no bf16 EUP/VPU).
    if bf16_exp is None:
        bf16_exp = not is_f32
    exp_dtype = jnp.bfloat16 if bf16_exp else f32

    qg = params['query_norm_g'].reshape(1, C).astype(f32)
    qb = params['query_norm_b'].reshape(1, C).astype(f32)
    fw = params['feat_2d_weights'].astype(compute_dtype)                   # [C, H]

    vmem_cap = _vmem_cap_bytes()

    # ---- Kernel 1: triangle bias ------------------------------------------------
    if bias_row_tile is None:
        bias_row_tile = N
        budget = 24 * 1024 * 1024          # double-buffered in+out blocks
        for t in (64, 32, 16, 8):          # prefer big row tiles (HBM-bound kernel)
            if N % t or (t * N) % 128:
                continue
            need = 2 * t * N * C * 4 + 2 * H * t * N * _itemsize(nb_dtype)
            if need <= budget:
                bias_row_tile = t
                break
    tq_b = bias_row_tile
    assert N % tq_b == 0 and ((tq_b * N) % 128 == 0 or tq_b == N)

    k1_need = (2 * tq_b * N * C * 4 + 2 * H * tq_b * N * _itemsize(nb_dtype)
               + 2 * C * H * _itemsize(compute_dtype) + (4 << 20))

    nb_flat = pl.pallas_call(
        functools.partial(_pair_bias_kernel, compute_dtype=compute_dtype,
                          precision=precision),
        out_shape=jax.ShapeDtypeStruct((B, H, N * N), nb_dtype),
        grid=(B, N // tq_b),
        in_specs=[
            pl.BlockSpec((None, tq_b, N, C), lambda b, t: (b, t, 0, 0)),
            pl.BlockSpec((1, C), lambda b, t: (0, 0)),
            pl.BlockSpec((1, C), lambda b, t: (0, 0)),
            pl.BlockSpec((C, H), lambda b, t: (0, 0)),
        ],
        out_specs=pl.BlockSpec((None, H, tq_b * N), lambda b, t: (b, 0, t)),
        compiler_params=pltpu.CompilerParams(
            dimension_semantics=("parallel", "parallel"),
            vmem_limit_bytes=int(min(max(k1_need, 8 << 20), vmem_cap))),
    )(pair_act, qg, qb, fw)
    nb = nb_flat.reshape(B, H, N, N)       # row-major-identical layout: free reshape

    # ---- Kernel 2: per-row attention ---------------------------------------------
    # Packed weights: Q(+gating) and K+V are each a single [C, 2C] RHS so one MXU call
    # fills the 256-wide systolic array on v6e/v7x; key_scale folded into the Q half;
    # the output projection is a single [H*dv, C] RHS.
    qw_flat = params['query_w'].reshape(C, C) * key_scale
    kw_flat = params['key_w'].reshape(C, C)
    vw_flat = params['value_w'].reshape(C, C)
    kvw = jnp.concatenate([kw_flat, vw_flat], axis=1).astype(compute_dtype)     # [C, 2C]
    if gating:
        gw_flat = params['gating_w'].reshape(C, C)
        qgw = jnp.concatenate([qw_flat, gw_flat], axis=1).astype(compute_dtype)  # [C, 2C]
        gb = params['gating_b'].reshape(1, C).astype(f32)                        # [1, H*dv]
    else:
        qgw = qw_flat.astype(compute_dtype)                                      # [C, C]
        gb = jnp.zeros((1, C), f32)
    ow = params['output_w'].reshape(C, C).astype(compute_dtype)                  # [H*dv, C]
    ob = params['output_b'].reshape(1, C).astype(f32)

    mask4 = pair_mask.reshape(B, N, 1, N)

    if q_tile is None:
        # 64 is usually the better choice on v5e (single vst slot / spill pressure).
        q_tile = 128 if N % 128 == 0 else (64 if N % 64 == 0 else N)
    assert N % q_tile == 0
    qgw_cols = qgw.shape[1]

    k2_need = (2 * N * C * 4                          # pair row (f32, double-buffered)
               + 2 * N * 4                            # mask row
               + 2 * H * N * N * _itemsize(nb_dtype)  # resident triangle bias
               + 2 * N * C * _itemsize(out_dtype)     # output row
               + 2 * (C * qgw_cols + 2 * C * C + C * C) * _itemsize(compute_dtype)
               + N * C * _itemsize(compute_dtype)     # xn scratch
               + 3 * q_tile * N * 4                   # logits / p temporaries
               + 2 * N * 2 * C * 4                    # kv / k_t temporaries
               + (4 << 20))
    # TODO(synk): on v7x, single-buffering the nb input (pipeline_mode=pl.Buffered(1))
    # would drop its second resident copy; left at the default for portability.

    kernel = functools.partial(
        _tri_attn_kernel, num_head=H, q_tile=q_tile, gating=gating,
        compute_dtype=compute_dtype, exp_dtype=exp_dtype, precision=precision)

    out = pl.pallas_call(
        kernel,
        out_shape=jax.ShapeDtypeStruct((B, N, N, C), out_dtype),
        grid=(B, N),
        in_specs=[
            pl.BlockSpec((None, None, N, C), lambda b, r: (b, r, 0, 0)),  # pair row
            pl.BlockSpec((None, None, 1, N), lambda b, r: (b, r, 0, 0)),  # mask row
            pl.BlockSpec((None, H, N, N), lambda b, r: (b, 0, 0, 0)),     # nb (per-batch resident)
            pl.BlockSpec((1, C), lambda b, r: (0, 0)),                    # LN gamma
            pl.BlockSpec((1, C), lambda b, r: (0, 0)),                    # LN beta
            pl.BlockSpec((C, qgw_cols), lambda b, r: (0, 0)),             # Q | gating packed
            pl.BlockSpec((C, 2 * C), lambda b, r: (0, 0)),                # K | V packed
            pl.BlockSpec((1, C), lambda b, r: (0, 0)),                    # gating bias
            pl.BlockSpec((C, C), lambda b, r: (0, 0)),                    # output_w
            pl.BlockSpec((1, C), lambda b, r: (0, 0)),                    # output_b
        ],
        out_specs=pl.BlockSpec((None, None, N, C), lambda b, r: (b, r, 0, 0)),
        scratch_shapes=[pltpu.VMEM((N, C), compute_dtype)],
        compiler_params=pltpu.CompilerParams(
            dimension_semantics=("parallel", "parallel"),
            vmem_limit_bytes=int(min(max(k2_need, 16 << 20), vmem_cap))),
    )(pair_act, mask4, nb, qg, qb, qgw, kvw, gb, ow, ob)
    return out


# --------------------------------------------------------------------------
# Pure-JAX reference mirroring the intended PyTorch forward (per_row).
# TODO(synk): the PyTorch Attention also adds `batched_bias` whenever
# nonbatched_bias is given, but TriangleAttention passes batched_bias=None
# (which would raise in PyTorch); that term is omitted here, as is the
# in-forward pdb.set_trace().
# --------------------------------------------------------------------------
def reference(pair_act, pair_mask, params, *, num_head, gating=True):
    C = pair_act.shape[-1]
    dh = C // num_head
    scale = dh ** -0.5
    hp = lax.Precision.HIGHEST
    x = _layer_norm(pair_act, params['query_norm_g'], params['query_norm_b'])
    nb = jnp.einsum('bqkc,ch->bhqk', x, params['feat_2d_weights'], precision=hp)
    bias = (FP16_HUGE * (pair_mask - 1.0))[:, :, None, None, :]           # [B,R,1,1,K]
    q = jnp.einsum('brqa,ahc->brqhc', x, params['query_w'], precision=hp) * scale
    k = jnp.einsum('brka,ahc->brkhc', x, params['key_w'], precision=hp)
    v = jnp.einsum('brka,ahc->brkhc', x, params['value_w'], precision=hp)
    logits = jnp.einsum('brqhc,brkhc->brhqk', q, k, precision=hp) + bias + nb[:, None]
    w = jax.nn.softmax(logits, axis=-1)
    wa = jnp.einsum('brhqk,brkhc->brqhc', w, v, precision=hp)
    if gating:
        gate = jax.nn.sigmoid(
            jnp.einsum('brqc,chv->brqhv', x, params['gating_w'], precision=hp)
            + params['gating_b'])
        wa = wa * gate
    return (jnp.einsum('brqhc,hco->brqo', wa, params['output_w'], precision=hp)
            + params['output_b'])


def make_params(key, num_channels, num_head):
    C, H = num_channels, num_head
    d = C // H
    ks = jax.random.split(key, 9)
    n = jax.random.normal
    return {
        'query_norm_g': 1.0 + 0.1 * n(ks[0], (C,), jnp.float32),
        'query_norm_b': 0.1 * n(ks[1], (C,), jnp.float32),
        'feat_2d_weights': n(ks[2], (C, H), jnp.float32) / jnp.sqrt(C),
        'query_w': n(ks[3], (C, H, d), jnp.float32) / jnp.sqrt(C),
        'key_w': n(ks[4], (C, H, d), jnp.float32) / jnp.sqrt(C),
        'value_w': n(ks[5], (C, H, d), jnp.float32) / jnp.sqrt(C),
        'gating_w': 0.1 * n(ks[6], (C, H, d), jnp.float32),
        'gating_b': jnp.ones((H, d), jnp.float32),
        'output_w': n(ks[7], (H, d, C), jnp.float32) / jnp.sqrt(H * d),
        'output_b': 0.05 * n(ks[8], (C,), jnp.float32),
    }


if __name__ == "__main__":
    # Small config: batch=2, N_res=16, pair channels=32, heads=4 (head dim 8).
    B, N_res, C, num_head = 2, 16, 32, 4

    key = jax.random.PRNGKey(0)
    k_act, k_par = jax.random.split(key, 2)
    pair_act = jax.random.normal(k_act, (B, N_res, N_res, C), jnp.float32)
    # Mask out the last 3 residues of every row (each row keeps valid keys).
    pair_mask = jnp.ones((B, N_res, N_res), jnp.float32).at[:, :, -3:].set(0.0)

    params = make_params(k_par, C, num_head)

    ref = jax.block_until_ready(
        reference(pair_act, pair_mask, params, num_head=num_head))

    # f32 verification path (MXU at precision=HIGHEST -> tight structural check).
    out_f32 = jax.block_until_ready(triangle_attention(
        pair_act, pair_mask, params, num_head=num_head,
        compute_dtype=jnp.float32))
    assert out_f32.shape == (B, N_res, N_res, C)
    err_f32 = float(jnp.max(jnp.abs(out_f32 - ref)))
    assert err_f32 < 2e-3, f"f32 path max abs err {err_f32}"

    # bf16 fast path (fused bf16 MXU projections, bf16 triangle bias, bf16 exp,
    # f32 softmax/accumulation).  Only exercised on a real TPU backend: CPU /
    # interpret XLA cannot execute BF16 x BF16 -> F32 dots.
    if jax.default_backend() == "tpu":
        out_bf16 = jax.block_until_ready(triangle_attention(
            pair_act, pair_mask, params, num_head=num_head,
            compute_dtype=jnp.bfloat16))
        err_bf16 = float(jnp.max(jnp.abs(out_bf16 - ref)))
        assert err_bf16 < 1.5e-1, f"bf16 path max abs err {err_bf16}"

    print("KERNEL_OK")
</pallas_src>

<mosaic_0001>
module attributes {stable_mosaic.version = 11 : i64} {
  func.func @_pair_bias_kernel(%arg0: i32, %arg1: i32, %arg2: memref<1x16x16x32xf32, #tpu.memory_space<vmem>>, %arg3: memref<1x32xf32, #tpu.memory_space<vmem>>, %arg4: memref<1x32xf32, #tpu.memory_space<vmem>>, %arg5: memref<32x4xf32, #tpu.memory_space<vmem>>, %arg6: memref<1x4x256xf32, #tpu.memory_space<vmem>>) attributes {dimension_semantics = [#tpu.dimension_semantics<parallel>, #tpu.dimension_semantics<parallel>], iteration_bounds = array<i64: 2, 1>, scalar_prefetch = 0 : i64, scratch_operands = 0 : i64, tpu.core_type = #tpu.core_type<tc>, window_params = [{transform_indices = @transform_0, window_bounds = array<i64: 1, 16, 16, 32>}, {pipeline_mode = #tpu.pipeline_mode<synchronous>, transform_indices = @transform_1, window_bounds = array<i64: 1, 32>}, {pipeline_mode = #tpu.pipeline_mode<synchronous>, transform_indices = @transform_2, window_bounds = array<i64: 1, 32>}, {pipeline_mode = #tpu.pipeline_mode<synchronous>, transform_indices = @transform_3, window_bounds = array<i64: 32, 4>}, {transform_indices = @transform_4, window_bounds = array<i64: 1, 4, 256>}]} {
    %c0 = arith.constant 0 : index
    %c0_0 = arith.constant 0 : index
    %c0_1 = arith.constant 0 : index
    %c0_2 = arith.constant 0 : index
    %0 = vector.load %arg2[%c0, %c0_0, %c0_1, %c0_2] : memref<1x16x16x32xf32, #tpu.memory_space<vmem>>, vector<1x16x16x32xf32>
    %1 = vector.shape_cast %0 : vector<1x16x16x32xf32> to vector<16x16x32xf32>
    %c0_3 = arith.constant 0 : index
    %c0_4 = arith.constant 0 : index
    %2 = vector.load %arg3[%c0_3, %c0_4] : memref<1x32xf32, #tpu.memory_space<vmem>>, vector<1x32xf32>
    %c0_5 = arith.constant 0 : index
    %c0_6 = arith.constant 0 : index
    %3 = vector.load %arg4[%c0_5, %c0_6] : memref<1x32xf32, #tpu.memory_space<vmem>>, vector<1x32xf32>
    %cst = arith.constant dense<0.000000e+00> : vector<16x16xf32>
    %4 = vector.multi_reduction <add>, %1, %cst [2] : vector<16x16x32xf32> to vector<16x16xf32>
    %5 = vector.shape_cast %4 : vector<16x16xf32> to vector<16x16x1xf32>
    %cst_7 = arith.constant 3.200000e+01 : f32
    %6 = vector.broadcast %cst_7 : f32 to vector<16x16x1xf32>
    %7 = arith.divf %5, %6 : vector<16x16x1xf32>
    %8 = vector.broadcast %7 : vector<16x16x1xf32> to vector<16x16x32xf32>
    %9 = arith.subf %1, %8 : vector<16x16x32xf32>
    %10 = arith.mulf %9, %9 : vector<16x16x32xf32>
    %cst_8 = arith.constant dense<0.000000e+00> : vector<16x16xf32>
    %11 = vector.multi_reduction <add>, %10, %cst_8 [2] : vector<16x16x32xf32> to vector<16x16xf32>
    %12 = vector.shape_cast %11 : vector<16x16xf32> to vector<16x16x1xf32>
    %cst_9 = arith.constant 3.200000e+01 : f32
    %13 = vector.broadcast %cst_9 : f32 to vector<16x16x1xf32>
    %14 = arith.divf %12, %13 : vector<16x16x1xf32>
    %15 = vector.broadcast %7 : vector<16x16x1xf32> to vector<16x16x32xf32>
    %16 = arith.subf %1, %15 : vector<16x16x32xf32>
    %cst_10 = arith.constant 9.99999974E-6 : f32
    %17 = vector.broadcast %cst_10 : f32 to vector<16x16x1xf32>
    %18 = arith.addf %14, %17 : vector<16x16x1xf32>
    %19 = math.rsqrt %18 : vector<16x16x1xf32>
    %20 = vector.broadcast %19 : vector<16x16x1xf32> to vector<16x16x32xf32>
    %21 = arith.mulf %16, %20 : vector<16x16x32xf32>
    %22 = vector.shape_cast %2 : vector<1x32xf32> to vector<1x1x32xf32>
    %23 = vector.broadcast %22 : vector<1x1x32xf32> to vector<16x16x32xf32>
    %24 = arith.mulf %21, %23 : vector<16x16x32xf32>
    %25 = vector.shape_cast %3 : vector<1x32xf32> to vector<1x1x32xf32>
    %26 = vector.broadcast %25 : vector<1x1x32xf32> to vector<16x16x32xf32>
    %27 = arith.addf %24, %26 : vector<16x16x32xf32>
    %28 = vector.shape_cast %27 : vector<16x16x32xf32> to vector<256x32xf32>
    %c0_11 = arith.constant 0 : index
    %c0_12 = arith.constant 0 : index
    %29 = vector.load %arg5[%c0_11, %c0_12] : memref<32x4xf32, #tpu.memory_space<vmem>>, vector<32x4xf32>
    %cst_13 = arith.constant dense<0.000000e+00> : vector<256x4xf32>
    %30 = tpu.matmul %28, %29, %cst_13 {dimension_numbers = #tpu.dot_dimension_numbers<[1], [0], [0], [1], [0, 0, 1, 1], [], []>, precision = #tpu.contract_precision<fp32>} : vector<256x32xf32>, vector<32x4xf32>, vector<256x4xf32> -> vector<256x4xf32>
    %31 = tpu.transpose %30, [1, 0] : vector<256x4xf32> -> vector<4x256xf32>
    %c0_14 = arith.constant 0 : index
    %c0_15 = arith.constant 0 : index
    %c0_16 = arith.constant 0 : index
    %32 = vector.load %arg6[%c0_14, %c0_15, %c0_16] : memref<1x4x256xf32, #tpu.memory_space<vmem>>, vector<1x4x256xf32>
    %33 = vector.shape_cast %32 : vector<1x4x256xf32> to vector<4x256xf32>
    %34 = vector.shape_cast %31 : vector<4x256xf32> to vector<1x4x256xf32>
    tpu.vector_store %arg6[%c0_14, %c0_15, %c0_16], %34 {strides = array<i32>} : memref<1x4x256xf32, #tpu.memory_space<vmem>>, vector<1x4x256xf32>,
    return
  }
  func.func @transform_0(%arg0: i32, %arg1: i32) -> (i32, i32, i32, i32) {
    %c0_i32 = arith.constant 0 : i32
    %c0_i32_0 = arith.constant 0 : i32
    %c0_i32_1 = arith.constant 0 : i32
    return %arg0, %arg1, %c0_i32, %c0_i32_0 : i32, i32, i32, i32
  }
  func.func @transform_1(%arg0: i32, %arg1: i32) -> (i32, i32) {
    %c0_i32 = arith.constant 0 : i32
    %c0_i32_0 = arith.constant 0 : i32
    %c0_i32_1 = arith.constant 0 : i32
    return %c0_i32, %c0_i32_0 : i32, i32
  }
  func.func @transform_2(%arg0: i32, %arg1: i32) -> (i32, i32) {
    %c0_i32 = arith.constant 0 : i32
    %c0_i32_0 = arith.constant 0 : i32
    %c0_i32_1 = arith.constant 0 : i32
    return %c0_i32, %c0_i32_0 : i32, i32
  }
  func.func @transform_3(%arg0: i32, %arg1: i32) -> (i32, i32) {
    %c0_i32 = arith.constant 0 : i32
    %c0_i32_0 = arith.constant 0 : i32
    %c0_i32_1 = arith.constant 0 : i32
    return %c0_i32, %c0_i32_0 : i32, i32
  }
  func.func @transform_4(%arg0: i32, %arg1: i32) -> (i32, i32, i32) {
    %c0_i32 = arith.constant 0 : i32
    %c0_i32_0 = arith.constant 0 : i32
    return %arg0, %c0_i32, %arg1 : i32, i32, i32
  }
}

</mosaic_0001>

<bundles_post_ra>
// kernel: tpu_custom_call.1
= control target key start
LH: loop header
LB: loop body
LE: loop exit
PB: predicated region body
PF: predicated region fallthrough
CT: control target
= control target key end

     0   :  { %9 = vsyncpa [#allocation3], 0  ;;  %s5170_s0 = inlined_call_operand.hbm [shape: f32[2,16,16,32], index: 0, kind: input, shape index: {}]   ;;  %s5171_s1 = inlined_call_operand.vmem [shape: f32[1,32], index: 1, kind: input, shape index: {}]   ;;  %s5172_s2 = inlined_call_operand.vmem [shape: f32[1,32], index: 2, kind: input, shape index: {}]   ;;  %s5173_s3 = inlined_call_operand.vmem [shape: f32[32,4], index: 3, kind: input, shape index: {}]   ;;  %s5174_s4 = inlined_call_operand.hbm [shape: f32[2,4,256], index: 4, kind: output, shape index: {}]  }
   0x1   :  { %11 = vsyncpa [#allocation3 + $0x1], 0 }
   0x2   :  { %12 = vsyncpa [#allocation4], 0 }
   0x3   :  { %14 = vsyncpa [#allocation4 + $0x1], 0  ;;  %s3691_s15 = smov 0   ;;  %s3693_s16 = smov 0  }
   0x4   :  { %s3695_s17 = smov 0   ;;  %s3697_s18 = smov 0  }
   0x5   :  { %s3699_s19 = smov 0   ;;  %s3701_s20 = smov 0  }
   0x6 LB: > { %s2853_s21 = sadd.s32 4294967295, %s3660_s20   ;;  %s2854_s22 = sadd.s32 4294967294, %s3660_s20   ;;  %s3660_s20 = sphi %s3701_s20, %s20_s20   ;;  %s3656_s19 = sphi %s3699_s19, %s5323_s19   ;;  %s3652_s18 = sphi %s3697_s18, %s5322_s18   ;;  %s3648_s17 = sphi %s3695_s17, %s5321_s17   ;;  %s3644_s16 = sphi %s3693_s16, %s5320_s16   ;;  %s3640_s15 = sphi %s3691_s15, %s5319_s15  }
   0x7   : > { %s32_s23 = sadd.s32 1, %s3656_s19  ;;  %s41_s24 = sadd.s32 1, %s3648_s17 }
   0x8   : > { %p34_p0 = scmp.ge.s32.totalorder %s32_s23, 2  ;;  %p48_p1 = scmp.ne.s32.totalorder %s3648_s17, %s3644_s16 }
   0x9   : > { %p49_p2 = scmp.eq.s32.totalorder %s3660_s20, 0  ;;  %p54_p3 = scmp.ne.s32.totalorder %s3644_s16, %s3640_s15 }
   0xa   : > { %s5325_s23 = smov (%p34_p0, %s32_s23), 0  ;;  %p55_p5 = scmp.eq.s32.totalorder %s2853_s21, 0 }
   0xb   : > { %p3732_p4 = por %p49_p2, %p48_p1  ;;  %s36_s26 = ssub.s32 %s3656_s19, %s5325_s23 }
   0xc   : > { %p143_p6 = scmp.eq.s32.totalorder %s2853_s21, 1  ;;  %p39_p7 = scmp.eq.s32.totalorder %s36_s26, 0 }
   0xd   : > { %p3738_p8 = por %p55_p5, %p54_p3  ;;  %p149_p10 = scmp.eq.s32.totalorder %s2854_s22, 1 }
   0xe   : > { %p3742_p9 = por %p143_p6, %p48_p1  ;;  %p3436_p13 = scmp.lt.s32.totalorder %s3660_s20, 2 }
   0xf   : > { %s3747_s29 = scalar_select %p39_p7, %s3648_s17, %s41_s24  }
  0x10   : > { %p3749_p11 = por %p149_p10, %p54_p3  ;;  %s178_s5 = sand.u32 1, %s3648_s17  }
  0x11   : > { %s2857_s6 = sshll.u32 %s178_s5, 8  ;;  %s2870_s7 = sshll.u32 %s3656_s19, 12 }
  0x12   : > { %s191_s10 = scalar_lea.hbm %s5170_s0, %s2870_s7  ;;  %s182_s11 = scalar_lea.vmem [#allocation2], %s2857_s6 }
  0x13   : > { %s192_s12 = sshll.u32 %s182_s11, 4  ;;  %p3762_p0 = pnand %p3436_p13, %p3732_p4  ;;  %s193_s12 = int_to_ptr.vmem [resolvable:$true] %s192_s12 }
  0x14   : > { %p2860_p1 = scmp.ge.s32.totalorder %s3660_s20, 1  ;;  %s179_s14 = scalar_lea.sflag [#allocation3], %s178_s5 }
  0x15   : > { %p3554_p2 = pneg %p3762_p0  ;;  %s3565_s21 = scalar_lea.vmem %s193_s12, 4096 }
  0x16   : > { %p3566_p3 = scmp.ne.s32.totalorder %s193_s12, %s3565_s21  ;;  %s3662_s22 = smov [#allocation2]  }
  0x17   : > { %s3570_s24 = sshll.u32 %s3662_s22, 4  ;;  %s3571_s24 = int_to_ptr.vmem [resolvable:$false] %s3570_s24 }
  0x18   : > { %p3568_p5 = pnand %p3566_p3, %p3554_p2  ;;  %s3572_s26 = scalar_lea.vmem %s3571_s24, 8192 }
  0x19   : > { %p3573_p7 = scmp.lt.s32.totalorder %s193_s12, %s3571_s24  ;;  %p3574_p10 = scmp.lt.s32.totalorder %s3572_s26, %s3565_s21 }
  0x1a   : > { %p3569_p6 = pneg %p3568_p5 }
  0x1b   : > { %p3575_p12 = por %p3574_p10, %p3573_p7 }
  0x1d   : > { %p3576_p4 = pnand %p3575_p12, %p3569_p6 }
  0x1f   : > { %3579 = shalt.err (!%p3576_p4)
}
  0x20   : > { %s3663_s25 = smov 128   ;;  %s3664_s5 = smov 8  }
  0x21   : > { %3431 = dma.hbm_to_vmem [thread:$0]  (!%p3762_p0), %s191_s10, 4096, %s193_s12, %s179_s14, %s3663_s25, %s3663_s25, %s3664_s5  }
  0x22   : > { %p200_p13 = scmp.lt.s32.totalorder %s3660_s20, 3 }
  0x24   : > { %p201_p2 = pnand %p2860_p1, %p200_p13 }
  0x26   : > { %204 = sbr.rel (%p201_p2) target bundleno = 891 (0x37b), region = 36 }
  0x2b   : > { %s3775_s6 = sand.u32 1, %s3644_s16  }
  0x2c   : > { %s2861_s7 = sshll.u32 %s3775_s6, 8  ;;  %s207_s8 = scalar_lea.sflag [#allocation3], %s3775_s6 }
  0x2d   : > { %s3779_s9 = scalar_lea.vmem [#allocation2], %s2861_s7 }
  0x2e   : > { %3631 = dma.done.wait (%p3738_p8), %s207_s8, 4096  }
  0x2f   : > { %3633 = vsyncadd (%p3738_p8), %s207_s8, 4294963200  ;;  %vm271_vm0 = vcmask 261120   ;;  %v3786_v0 = vld [vmem:[%s3779_s9] sm:$0xff]  ;;  %v3789_v1 = vld [vmem:[%s3779_s9 + $0x10] sm:$0xff]  ;;  %s2862_s7 = sshll.u32 %s3775_s6, 3  ;;  %s2871_s8 = sshll.u32 %s3652_s18, 7 }
  0x30   : > { %v3792_v2 = vld [vmem:[%s3779_s9 + $0x8] sm:$0xff]  ;;  %v272_v3 = vsel %vm271_vm0, %v3786_v0, 0.0  ;;  %v278_v4 = vsel %vm271_vm0, %v3789_v1, 0.0  ;;  %v3799_v5 = vld [vmem:[%s3779_s9 + $0x18] sm:$0xff]  ;;  %v3806_v8 = vld [vmem:[%s3779_s9 + $0x20] sm:$0xff]  ;;  %s2767_s12 = scalar_lea.hbm %s5174_s4, %s2871_s8  ;;  %s2753_s13 = scalar_lea.sflag [#allocation4], %s3775_s6 }
  0x31   : > { %273 = vadd.xlane.f32.xlu0 %v272_v3  ;;  %279 = vadd.xlane.f32.xlu1 %v278_v4  ;;  %v275_v6 = vsel %vm271_vm0, %v3792_v2, 0.0  ;;  %v281_v7 = vsel %vm271_vm0, %v3799_v5, 0.0  ;;  %v3809_v9 = vld [vmem:[%s3779_s9 + $0x28] sm:$0xff]  ;;  %v284_v10 = vsel %vm271_vm0, %v3806_v8, 0.0  ;;  %v3816_v12 = vld [vmem:[%s3779_s9 + $0x30] sm:$0xff]  ;;  %v3819_v13 = vld [vmem:[%s3779_s9 + $0x38] sm:$0xff] }
  0x32   : > { %v287_v11 = vsel %vm271_vm0, %v3809_v9, 0.0  ;;  %v290_v14 = vsel %vm271_vm0, %v3816_v12, 0.0  ;;  %v293_v15 = vsel %vm271_vm0, %v3819_v13, 0.0  ;;  %v3826_v16 = vld [vmem:[%s3779_s9 + $0x40] sm:$0xff]  ;;  %v3829_v17 = vld [vmem:[%s3779_s9 + $0x48] sm:$0xff]  ;;  %v3836_v20 = vld [vmem:[%s3779_s9 + $0x50] sm:$0xff] }
  0x33   : > { %v296_v18 = vsel %vm271_vm0, %v3826_v16, 0.0  ;;  %v299_v19 = vsel %vm271_vm0, %v3829_v17, 0.0  ;;  %v3839_v21 = vld [vmem:[%s3779_s9 + $0x58] sm:$0xff]  ;;  %v302_v22 = vsel %vm271_vm0, %v3836_v20, 0.0  ;;  %v3846_v24 = vld [vmem:[%s3779_s9 + $0x60] sm:$0xff]  ;;  %v3849_v25 = vld [vmem:[%s3779_s9 + $0x68] sm:$0xff] }
  0x34   : > { %v305_v23 = vsel %vm271_vm0, %v3839_v21, 0.0  ;;  %v308_v26 = vsel %vm271_vm0, %v3846_v24, 0.0  ;;  %v311_v27 = vsel %vm271_vm0, %v3849_v25, 0.0  ;;  %v3856_v28 = vld [vmem:[%s3779_s9 + $0x70] sm:$0xff]  ;;  %v3859_v29 = vld [vmem:[%s3779_s9 + $0x78] sm:$0xff]  ;;  %v3866_v32 = vld [vmem:[%s3779_s9 + $0x80] sm:$0xff] }
  0x35   : > { %276 = vadd.xlane.f32.xlu0 %v275_v6  ;;  %282 = vadd.xlane.f32.xlu1 %v281_v7  ;;  %v314_v30 = vsel %vm271_vm0, %v3856_v28, 0.0  ;;  %v317_v31 = vsel %vm271_vm0, %v3859_v29, 0.0  ;;  %v3869_v33 = vld [vmem:[%s3779_s9 + $0x88] sm:$0xff]  ;;  %v320_v34 = vsel %vm271_vm0, %v3866_v32, 0.0  ;;  %v3876_v36 = vld [vmem:[%s3779_s9 + $0x90] sm:$0xff]  ;;  %v3879_v37 = vld [vmem:[%s3779_s9 + $0x98] sm:$0xff] }
  0x36   : > { %v323_v35 = vsel %vm271_vm0, %v3869_v33, 0.0  ;;  %v326_v38 = vsel %vm271_vm0, %v3876_v36, 0.0  ;;  %v329_v39 = vsel %vm271_vm0, %v3879_v37, 0.0  ;;  %v3886_v40 = vld [vmem:[%s3779_s9 + $0xa0] sm:$0xff]  ;;  %v3889_v41 = vld [vmem:[%s3779_s9 + $0xa8] sm:$0xff]  ;;  %v3896_v44 = vld [vmem:[%s3779_s9 + $0xb0] sm:$0xff] }
  0x37   : > { %v332_v42 = vsel %vm271_vm0, %v3886_v40, 0.0  ;;  %v335_v43 = vsel %vm271_vm0, %v3889_v41, 0.0  ;;  %v3899_v45 = vld [vmem:[%s3779_s9 + $0xb8] sm:$0xff]  ;;  %v338_v46 = vsel %vm271_vm0, %v3896_v44, 0.0  ;;  %v3906_v48 = vld [vmem:[%s3779_s9 + $0xc0] sm:$0xff]  ;;  %v3909_v49 = vld [vmem:[%s3779_s9 + $0xc8] sm:$0xff] }
  0x38   : > { %v341_v47 = vsel %vm271_vm0, %v3899_v45, 0.0  ;;  %v344_v50 = vsel %vm271_vm0, %v3906_v48, 0.0  ;;  %v347_v51 = vsel %vm271_vm0, %v3909_v49, 0.0  ;;  %v3916_v52 = vld [vmem:[%s3779_s9 + $0xd0] sm:$0xff]  ;;  %v3919_v53 = vld [vmem:[%s3779_s9 + $0xd8] sm:$0xff]  ;;  %v3926_v56 = vld [vmem:[%s3779_s9 + $0xe0] sm:$0xff] }
  0x39   : > { %285 = vadd.xlane.f32.xlu0 %v284_v10  ;;  %288 = vadd.xlane.f32.xlu1 %v287_v11  ;;  %v350_v54 = vsel %vm271_vm0, %v3916_v52, 0.0  ;;  %v353_v55 = vsel %vm271_vm0, %v3919_v53, 0.0  ;;  %v3929_v57 = vld [vmem:[%s3779_s9 + $0xe8] sm:$0xff]  ;;  %v356_v58 = vsel %vm271_vm0, %v3926_v56, 0.0  ;;  %v3936_v60 = vld [vmem:[%s3779_s9 + $0xf0] sm:$0xff]  ;;  %v3939_v61 = vld [vmem:[%s3779_s9 + $0xf8] sm:$0xff] }
  0x3a   : > { %v359_v59 = vsel %vm271_vm0, %v3929_v57, 0.0  ;;  %v362_v62 = vsel %vm271_vm0, %v3936_v60, 0.0  ;;  %v365_v63 = vsel %vm271_vm0, %v3939_v61, 0.0  ;;  %s234_s9 = scalar_lea.vmem [#allocation5], %s2862_s7  ;;  %s3665_s21 = smov [#allocation5]  }
  0x3b   : > { %s2769_s27 = sshll.u32 %s234_s9, 4  ;;  %s3584_s22 = sshll.u32 %s3665_s21, 4  ;;  %s2770_s27 = int_to_ptr.vmem [resolvable:$true] %s2769_s27  ;;  %s3585_s22 = int_to_ptr.vmem [resolvable:$false] %s3584_s22 }
  0x3c   : > { %s3580_s14 = scalar_lea.vmem %s2770_s27, 128  ;;  %s3586_s18 = scalar_lea.vmem %s3585_s22, 256 }
  0x3d   : > { %291 = vadd.xlane.f32.xlu0 %v290_v14  ;;  %294 = vadd.xlane.f32.xlu1 %v293_v15  ;;  %p3581_p8 = scmp.ne.s32.totalorder %s2770_s27, %s3580_s14  ;;  %p3587_p1 = scmp.lt.s32.totalorder %s2770_s27, %s3585_s22 }
  0x3e   : > { %p3588_p3 = scmp.lt.s32.totalorder %s3586_s18, %s3580_s14 }
  0x3f   : > { %p3582_p12 = pnand %p3581_p8, %p3742_p9 }
  0x40   : > { %p3589_p5 = por %p3588_p3, %p3587_p1 }
  0x41   : > { %297 = vadd.xlane.f32.xlu0 %v296_v18  ;;  %300 = vadd.xlane.f32.xlu1 %v299_v19  ;;  %p3583_p0 = pneg %p3582_p12 }
  0x43   : > { %p3590_p6 = pnand %p3589_p5, %p3583_p0 }
  0x45   : > { %303 = vadd.xlane.f32.xlu0 %v302_v22  ;;  %306 = vadd.xlane.f32.xlu1 %v305_v23 }
  0x49   : > { %309 = vadd.xlane.f32.xlu0 %v308_v26  ;;  %312 = vadd.xlane.f32.xlu1 %v311_v27 }
  0x4d   : > { %315 = vadd.xlane.f32.xlu0 %v314_v30  ;;  %318 = vadd.xlane.f32.xlu1 %v317_v31 }
  0x51   : > { %321 = vadd.xlane.f32.xlu0 %v320_v34  ;;  %324 = vadd.xlane.f32.xlu1 %v323_v35 }
  0x55   : > { %327 = vadd.xlane.f32.xlu0 %v326_v38  ;;  %330 = vadd.xlane.f32.xlu1 %v329_v39 }
  0x59   : > { %333 = vadd.xlane.f32.xlu0 %v332_v42  ;;  %336 = vadd.xlane.f32.xlu1 %v335_v43 }
  0x5d   : > { %339 = vadd.xlane.f32.xlu0 %v338_v46  ;;  %342 = vadd.xlane.f32.xlu1 %v341_v47 }
  0x61   : > { %345 = vadd.xlane.f32.xlu0 %v344_v50  ;;  %348 = vadd.xlane.f32.xlu1 %v347_v51 }
  0x65   : > { %351 = vadd.xlane.f32.xlu0 %v350_v54  ;;  %354 = vadd.xlane.f32.xlu1 %v353_v55 }
  0x69   : > { %357 = vadd.xlane.f32.xlu0 %v356_v58  ;;  %360 = vadd.xlane.f32.xlu1 %v359_v59 }
  0x6d   : > { %363 = vadd.xlane.f32.xlu0 %v362_v62  ;;  %366 = vadd.xlane.f32.xlu1 %v365_v63 }
  0xba   : > { %v274_v3 = vpop.xlane.xlu0 %273  ;;  %v280_v4 = vpop.xlane.xlu1 %279 }
  0xbb   : > { %v369_v6 = vmul.f32 0.03125, %v274_v3  ;;  %v371_v7 = vmul.f32 0.03125, %v280_v4 }
  0xbd   : > { %v3946_v10 = vsub.f32 %v3786_v0, %v369_v6  ;;  %v3949_v11 = vsub.f32 %v3789_v1, %v371_v7 }
  0xbe   : > { %v277_v14 = vpop.xlane.xlu0 %276  ;;  %v283_v15 = vpop.xlane.xlu1 %282 }
  0xbf   : > { %v370_v18 = vmul.f32 0.03125, %v277_v14  ;;  %v372_v19 = vmul.f32 0.03125, %v283_v15  ;;  %v433_v22 = vmul.f32 %v3946_v10, %v3946_v10  ;;  %v435_v23 = vmul.f32 %v3949_v11, %v3949_v11 }
  0xc1   : > { %v3956_v26 = vsub.f32 %v3792_v2, %v370_v18  ;;  %v3959_v27 = vsub.f32 %v3799_v5, %v372_v19  ;;  %v465_v0 = vsel %vm271_vm0, %v433_v22, 0.0  ;;  %v471_v31 = vsel %vm271_vm0, %v435_v23, 0.0 }
  0xc2   : > { %466 = vadd.xlane.f32.xlu0 %v465_v0  ;;  %v286_v1 = vpop.xlane.xlu0 %285  ;;  %v289_v30 = vpop.xlane.xlu1 %288 }
  0xc3   : > { %v373_v34 = vmul.f32 0.03125, %v286_v1  ;;  %v374_v35 = vmul.f32 0.03125, %v289_v30  ;;  %v434_v38 = vmul.f32 %v3956_v26, %v3956_v26  ;;  %v436_v39 = vmul.f32 %v3959_v27, %v3959_v27 }
  0xc5   : > { %v3968_v2 = vsub.f32 %v3806_v8, %v373_v34  ;;  %v3971_v5 = vsub.f32 %v3809_v9, %v374_v35  ;;  %v468_v42 = vsel %vm271_vm0, %v434_v38, 0.0  ;;  %v474_v47 = vsel %vm271_vm0, %v436_v39, 0.0 }
  0xc6   : > { %472 = vadd.xlane.f32.xlu0 %v471_v31  ;;  %469 = vadd.xlane.f32.xlu1 %v468_v42  ;;  %v292_v43 = vpop.xlane.xlu0 %291  ;;  %v295_v46 = vpop.xlane.xlu1 %294 }
  0xc7   : > { %v375_v50 = vmul.f32 0.03125, %v292_v43  ;;  %v376_v51 = vmul.f32 0.03125, %v295_v46  ;;  %v437_v54 = vmul.f32 %v3968_v2, %v3968_v2  ;;  %v438_v8 = vmul.f32 %v3971_v5, %v3971_v5 }
  0xc9   : > { %v3980_v55 = vsub.f32 %v3816_v12, %v375_v50  ;;  %v3983_v9 = vsub.f32 %v3819_v13, %v376_v51  ;;  %v477_v58 = vsel %vm271_vm0, %v437_v54, 0.0  ;;  %v480_v63 = vsel %vm271_vm0, %v438_v8, 0.0 }
  0xca   : > { %475 = vadd.xlane.f32.xlu1 %v474_v47  ;;  %478 = vadd.xlane.f32.xlu0 %v477_v58  ;;  %v298_v59 = vpop.xlane.xlu0 %297  ;;  %v301_v62 = vpop.xlane.xlu1 %300 }
  0xcb   : > { %v377_v3 = vmul.f32 0.03125, %v298_v59  ;;  %v378_v4 = vmul.f32 0.03125, %v301_v62  ;;  %v439_v6 = vmul.f32 %v3980_v55, %v3980_v55  ;;  %v440_v12 = vmul.f32 %v3983_v9, %v3983_v9 }
  0xcd   : > { %v3992_v7 = vsub.f32 %v3826_v16, %v377_v3  ;;  %v3995_v13 = vsub.f32 %v3829_v17, %v378_v4  ;;  %v483_v14 = vsel %vm271_vm0, %v439_v6, 0.0  ;;  %v486_v19 = vsel %vm271_vm0, %v440_v12, 0.0 }
  0xce   : > { %481 = vadd.xlane.f32.xlu1 %v480_v63  ;;  %484 = vadd.xlane.f32.xlu0 %v483_v14  ;;  %v304_v15 = vpop.xlane.xlu0 %303  ;;  %v307_v18 = vpop.xlane.xlu1 %306  ;;  %v768_v63 = vld [vmem:[%s5173_s3 + $0x18] sm:$0xff] }
  0xcf   : > { %v379_v22 = vmul.f32 0.03125, %v304_v15  ;;  %v380_v23 = vmul.f32 0.03125, %v307_v18  ;;  %v441_v0 = vmul.f32 %v3992_v7, %v3992_v7  ;;  %v442_v16 = vmul.f32 %v3995_v13, %v3995_v13  ;;  %v767_v18 = vld [vmem:[%s5173_s3 + $0x10] sm:$0xff] }
  0xd0   : > { %v4038_v12 = vand.u32 4294901760, %v768_v63 }
  0xd1   : > { %v4004_v1 = vsub.f32 %v3836_v20, %v379_v22  ;;  %v4007_v17 = vsub.f32 %v3839_v21, %v380_v23  ;;  %v489_v30 = vsel %vm271_vm0, %v441_v0, 0.0  ;;  %v492_v35 = vsel %vm271_vm0, %v442_v16, 0.0 }
  0xd2   : > { %487 = vadd.xlane.f32.xlu1 %v486_v19  ;;  %490 = vadd.xlane.f32.xlu0 %v489_v30  ;;  %v310_v31 = vpop.xlane.xlu0 %309  ;;  %v313_v34 = vpop.xlane.xlu1 %312  ;;  %v4048_v19 = vsub.f32 %v768_v63, %v4038_v12  ;;  %v4050_v22 = vand.u32 4294901760, %v767_v18  ;;  %v766_v30 = vld [vmem:[%s5173_s3 + $0x8] sm:$0xff] }
  0xd3   : > { %v381_v38 = vmul.f32 0.03125, %v310_v31  ;;  %v382_v39 = vmul.f32 0.03125, %v313_v34  ;;  %v443_v42 = vmul.f32 %v4004_v1, %v4004_v1  ;;  %v444_v20 = vmul.f32 %v4007_v17, %v4007_v17  ;;  %3088 = vmatprep.subr.mxu0 %v4038_v12 }
  0xd4   : > { %3089 = vmatpush3.msra.mxu0 %v4038_v12 }
  0xd5   : > { %v4016_v43 = vsub.f32 %v3846_v24, %v381_v38  ;;  %v4019_v21 = vsub.f32 %v3849_v25, %v382_v39  ;;  %v495_v46 = vsel %vm271_vm0, %v443_v42, 0.0  ;;  %v498_v51 = vsel %vm271_vm0, %v444_v20, 0.0  ;;  %3090 = vmatprep.subr.mxu0 %v4050_v22 }
  0xd6   : > { %493 = vadd.xlane.f32.xlu1 %v492_v35  ;;  %496 = vadd.xlane.f32.xlu0 %v495_v46  ;;  %v316_v47 = vpop.xlane.xlu0 %315  ;;  %v319_v50 = vpop.xlane.xlu1 %318  ;;  %v4071_v38 = vand.u32 4294901760, %v766_v30 }
  0xd7   : > { %v383_v54 = vmul.f32 0.03125, %v316_v47  ;;  %v384_v8 = vmul.f32 0.03125, %v319_v50  ;;  %v445_v58 = vmul.f32 %v4016_v43, %v4016_v43  ;;  %v446_v24 = vmul.f32 %v4019_v21, %v4019_v21  ;;  %v765_v47 = vld [vmem:[%s5173_s3] sm:$0xff]  ;;  %3091 = vmatpush3.msra.mxu0 %v4050_v22 }
  0xd8   : > { %3092 = vmatprep.subr.mxu0 %v4071_v38 }
  0xd9   : > { %v4028_v59 = vsub.f32 %v3856_v28, %v383_v54  ;;  %v4031_v25 = vsub.f32 %v3859_v29, %v384_v8  ;;  %v501_v62 = vsel %vm271_vm0, %v445_v58, 0.0  ;;  %v504_v6 = vsel %vm271_vm0, %v446_v24, 0.0  ;;  %3093 = vmatpush3.msra.mxu0 %v4071_v38 }
  0xda   : > { %499 = vadd.xlane.f32.xlu1 %v498_v51  ;;  %502 = vadd.xlane.f32.xlu0 %v501_v62  ;;  %v322_v3 = vpop.xlane.xlu0 %321  ;;  %v325_v4 = vpop.xlane.xlu1 %324  ;;  %v4087_v54 = vsub.f32 %v766_v30, %v4071_v38  ;;  %v4089_v8 = vand.u32 4294901760, %v765_v47 }
  0xdb   : > { %v385_v14 = vmul.f32 0.03125, %v322_v3  ;;  %v386_v28 = vmul.f32 0.03125, %v325_v4  ;;  %v447_v29 = vmul.f32 %v4028_v59, %v4028_v59  ;;  %v448_v15 = vmul.f32 %v4031_v25, %v4031_v25 }
  0xdc   : > { %3094 = vmatprep.subr.mxu0 %v4089_v8 }
  0xdd   : > { %v4054_v23 = vsub.f32 %v3866_v32, %v385_v14  ;;  %v4057_v0 = vsub.f32 %v3869_v33, %v386_v28  ;;  %v507_v16 = vsel %vm271_vm0, %v447_v29, 0.0  ;;  %v510_v35 = vsel %vm271_vm0, %v448_v15, 0.0  ;;  %3095 = vmatpush3.msra.mxu0 %v4089_v8 }
  0xde   : > { %505 = vadd.xlane.f32.xlu1 %v504_v6  ;;  %508 = vadd.xlane.f32.xlu0 %v507_v16  ;;  %v328_v31 = vpop.xlane.xlu0 %327  ;;  %v331_v34 = vpop.xlane.xlu1 %330  ;;  %v4066_v32 = vand.u32 4294901760, %v4048_v19  ;;  %v4069_v33 = vsub.f32 %v767_v18, %v4050_v22 }
  0xdf   : > { %v387_v39 = vmul.f32 0.03125, %v328_v31  ;;  %v388_v42 = vmul.f32 0.03125, %v331_v34  ;;  %v449_v20 = vmul.f32 %v4054_v23, %v4054_v23  ;;  %v450_v46 = vmul.f32 %v4057_v0, %v4057_v0  ;;  %3200 = vmatprep.subr.mxu0 %v4048_v19 }
  0xe0   : > { %v1282_v50 = vsub.f32 %v4048_v19, %v4066_v32  ;;  %v4084_v51 = vand.u32 4294901760, %v4069_v33 }
  0xe1   : > { %v4093_v58 = vsub.f32 %v3876_v36, %v387_v39  ;;  %v4096_v24 = vsub.f32 %v3879_v37, %v388_v42  ;;  %v513_v62 = vsel %vm271_vm0, %v449_v20, 0.0  ;;  %v516_v63 = vsel %vm271_vm0, %v450_v46, 0.0 }
  0xe2   : > { %511 = vadd.xlane.f32.xlu1 %v510_v35  ;;  %514 = vadd.xlane.f32.xlu0 %v513_v62  ;;  %v334_v3 = vpop.xlane.xlu0 %333  ;;  %v337_v4 = vpop.xlane.xlu1 %336  ;;  %v1283_v6 = vand.u32 4294901760, %v1282_v50  ;;  %v1289_v14 = vsub.f32 %v4069_v33, %v4084_v51  ;;  %v4104_v36 = vand.u32 4294901760, %v4087_v54  ;;  %v4107_v37 = vsub.f32 %v765_v47, %v4089_v8 }
  0xe3   : > { %v389_v28 = vmul.f32 0.03125, %v334_v3  ;;  %v390_v29 = vmul.f32 0.03125, %v337_v4  ;;  %v451_v15 = vmul.f32 %v4093_v58, %v4093_v58  ;;  %v452_v18 = vmul.f32 %v4096_v24, %v4096_v24 }
  0xe4   : > { %5247 = vst [vmem:[#allocation8_spill] sm:$0xff] %v4104_v36  ;;  %3144 = vmatprep.subr.mxu1 %v1283_v6  ;;  %v1290_v16 = vand.u32 4294901760, %v1289_v14  ;;  %v1296_v30 = vsub.f32 %v4087_v54, %v4104_v36  ;;  %v4117_v31 = vand.u32 4294901760, %v4107_v37 }
  0xe5   : > { %v4121_v34 = vsub.f32 %v3886_v40, %v389_v28  ;;  %v4124_v35 = vsub.f32 %v3889_v41, %v390_v29  ;;  %v519_v39 = vsel %vm271_vm0, %v451_v15, 0.0  ;;  %3145 = vmatpush3.msra.mxu1 %v1283_v6  ;;  %v522_v46 = vsel %vm271_vm0, %v452_v18, 0.0 }
  0xe6   : > { %5248 = vst [vmem:[#allocation9_spill] sm:$0xff] %v4117_v31  ;;  %517 = vadd.xlane.f32.xlu1 %v516_v63  ;;  %520 = vadd.xlane.f32.xlu0 %v519_v39  ;;  %v340_v42 = vpop.xlane.xlu0 %339  ;;  %v343_v20 = vpop.xlane.xlu1 %342  ;;  %v1297_v47 = vand.u32 4294901760, %v1296_v30  ;;  %v1303_v50 = vsub.f32 %v4107_v37, %v4117_v31 }
  0xe7   : > { %v391_v40 = vmul.f32 0.03125, %v340_v42  ;;  %v392_v62 = vmul.f32 0.03125, %v343_v20  ;;  %v453_v41 = vmul.f32 %v4121_v34, %v4121_v34  ;;  %v454_v3 = vmul.f32 %v4124_v35, %v4124_v35  ;;  %3146 = vmatprep.subr.mxu1 %v1290_v16 }
  0xe8   : > { %3147 = vmatpush3.msra.mxu1 %v1290_v16  ;;  %v1304_v63 = vand.u32 4294901760, %v1303_v50 }
  0xe9   : > { %v4137_v4 = vsub.f32 %v3896_v44, %v391_v40  ;;  %v4140_v6 = vsub.f32 %v3899_v45, %v392_v62  ;;  %v525_v14 = vsel %vm271_vm0, %v453_v41, 0.0  ;;  %3148 = vmatprep.subr.mxu1 %v1297_v47  ;;  %v528_v15 = vsel %vm271_vm0, %v454_v3, 0.0 }
  0xea   : > { %523 = vadd.xlane.f32.xlu1 %v522_v46  ;;  %526 = vadd.xlane.f32.xlu0 %v525_v14  ;;  %v346_v28 = vpop.xlane.xlu0 %345  ;;  %v349_v29 = vpop.xlane.xlu1 %348 }
  0xeb   : > { %v393_v18 = vmul.f32 0.03125, %v346_v28  ;;  %v394_v30 = vmul.f32 0.03125, %v349_v29  ;;  %v455_v16 = vmul.f32 %v4137_v4, %v4137_v4  ;;  %v456_v44 = vmul.f32 %v4140_v6, %v4140_v6  ;;  %3149 = vmatpush3.msra.mxu1 %v1297_v47 }
  0xec   : > { %3150 = vmatprep.subr.mxu1 %v1304_v63 }
  0xed   : > { %v4149_v45 = vsub.f32 %v3906_v48, %v393_v18  ;;  %v4152_v39 = vsub.f32 %v3909_v49, %v394_v30  ;;  %v531_v42 = vsel %vm271_vm0, %v455_v16, 0.0  ;;  %3151 = vmatpush3.msra.mxu1 %v1304_v63  ;;  %v534_v50 = vsel %vm271_vm0, %v456_v44, 0.0 }
  0xee   : > { %529 = vadd.xlane.f32.xlu1 %v528_v15  ;;  %532 = vadd.xlane.f32.xlu0 %v531_v42  ;;  %v352_v20 = vpop.xlane.xlu0 %351  ;;  %v355_v46 = vpop.xlane.xlu1 %354 }
  0xef   : > { %v395_v40 = vmul.f32 0.03125, %v352_v20  ;;  %v396_v62 = vmul.f32 0.03125, %v355_v46  ;;  %v457_v47 = vmul.f32 %v4149_v45, %v4149_v45  ;;  %v458_v48 = vmul.f32 %v4152_v39, %v4152_v39  ;;  %3256 = vmatprep.subr.mxu1 %v4038_v12 }
  0xf1   : > { %v4162_v49 = vsub.f32 %v3916_v52, %v395_v40  ;;  %v4165_v41 = vsub.f32 %v3919_v53, %v396_v62  ;;  %v537_v3 = vsel %vm271_vm0, %v457_v47, 0.0  ;;  %v540_v28 = vsel %vm271_vm0, %v458_v48, 0.0 }
  0xf2   : > { %535 = vadd.xlane.f32.xlu1 %v534_v50  ;;  %538 = vadd.xlane.f32.xlu0 %v537_v3  ;;  %v358_v63 = vpop.xlane.xlu0 %357  ;;  %v361_v14 = vpop.xlane.xlu1 %360 }
  0xf3   : > { %v397_v29 = vmul.f32 0.03125, %v358_v63  ;;  %v398_v15 = vmul.f32 0.03125, %v361_v14  ;;  %v459_v18 = vmul.f32 %v4162_v49, %v4162_v49  ;;  %v460_v52 = vmul.f32 %v4165_v41, %v4165_v41 }
  0xf5   : > { %v4174_v30 = vsub.f32 %v3926_v56, %v397_v29  ;;  %v4177_v53 = vsub.f32 %v3929_v57, %v398_v15  ;;  %v543_v16 = vsel %vm271_vm0, %v459_v18, 0.0  ;;  %v546_v20 = vsel %vm271_vm0, %v460_v52, 0.0 }
  0xf6   : > { %541 = vadd.xlane.f32.xlu1 %v540_v28  ;;  %544 = vadd.xlane.f32.xlu0 %v543_v16  ;;  %v364_v44 = vpop.xlane.xlu0 %363  ;;  %v367_v42 = vpop.xlane.xlu1 %366 }
  0xf7   : > { %v399_v46 = vmul.f32 0.03125, %v364_v44  ;;  %v400_v50 = vmul.f32 0.03125, %v367_v42  ;;  %v461_v40 = vmul.f32 %v4174_v30, %v4174_v30  ;;  %v462_v56 = vmul.f32 %v4177_v53, %v4177_v53 }
  0xf9   : > { %v4186_v62 = vsub.f32 %v3936_v60, %v399_v46  ;;  %v4189_v57 = vsub.f32 %v3939_v61, %v400_v50  ;;  %v549_v47 = vsel %vm271_vm0, %v461_v40, 0.0  ;;  %v552_v48 = vsel %vm271_vm0, %v462_v56, 0.0 }
  0xfa   : > { %547 = vadd.xlane.f32.xlu1 %v546_v20  ;;  %550 = vadd.xlane.f32.xlu0 %v549_v47 }
  0xfb   : > { %v463_v3 = vmul.f32 %v4186_v62, %v4186_v62  ;;  %v464_v63 = vmul.f32 %v4189_v57, %v4189_v57 }
  0xfd   : > { %v555_v14 = vsel %vm271_vm0, %v463_v3, 0.0  ;;  %v558_v60 = vsel %vm271_vm0, %v464_v63, 0.0 }
  0xfe   : > { %553 = vadd.xlane.f32.xlu1 %v552_v48  ;;  %556 = vadd.xlane.f32.xlu0 %v555_v14 }
 0x102   : > { %559 = vadd.xlane.f32.xlu1 %v558_v60 }
 0x14b   : > { %v467_v61 = vpop.xlane.xlu0 %466 }
 0x14c   : > { %v561_v28 = vmul.f32 0.03125, %v467_v61 }
 0x14e   : > { %v593_v29 = vadd.f32 1e-05, %v561_v28 }
 0x14f   : > { %v470_v15 = vpop.xlane.xlu1 %469  ;;  %v473_v18 = vpop.xlane.xlu0 %472 }
 0x150   : > { %3488 = vrsqrt.f32 %v593_v29  ;;  %v562_v52 = vmul.f32 0.03125, %v470_v15  ;;  %v563_v16 = vmul.f32 0.03125, %v473_v18 }
 0x152   : > { %v594_v44 = vadd.f32 1e-05, %v562_v52  ;;  %v595_v42 = vadd.f32 1e-05, %v563_v16  ;;  %v4202_v16 = vld [vmem:[%s5171_s1] ss:$0 sm:$0xff] }
 0x153   : > { %v476_v20 = vpop.xlane.xlu1 %475  ;;  %v479_v46 = vpop.xlane.xlu0 %478 }
 0x154   : > { %3490 = vrsqrt.f32 %v594_v44  ;;  %v564_v50 = vmul.f32 0.03125, %v476_v20  ;;  %v565_v40 = vmul.f32 0.03125, %v479_v46 }
 0x155   : > { %3492 = vrsqrt.f32 %v595_v42 }
 0x156   : > { %v596_v56 = vadd.f32 1e-05, %v564_v50  ;;  %v597_v47 = vadd.f32 1e-05, %v565_v40  ;;  %v4208_v50 = vld [vmem:[%s5172_s2] ss:$0 sm:$0xff] }
 0x157   : > { %v482_v48 = vpop.xlane.xlu1 %481  ;;  %v485_v3 = vpop.xlane.xlu0 %484 }
 0x158   : > { %3494 = vrsqrt.f32 %v596_v56  ;;  %v566_v63 = vmul.f32 0.03125, %v482_v48  ;;  %v567_v14 = vmul.f32 0.03125, %v485_v3 }
 0x159   : > { %3496 = vrsqrt.f32 %v597_v47 }
 0x15a   : > { %v598_v60 = vadd.f32 1e-05, %v566_v63  ;;  %v599_v61 = vadd.f32 1e-05, %v567_v14 }
 0x15b   : > { %v488_v28 = vpop.xlane.xlu1 %487  ;;  %v491_v29 = vpop.xlane.xlu0 %490 }
 0x15c   : > { %3498 = vrsqrt.f32 %v598_v60  ;;  %v568_v15 = vmul.f32 0.03125, %v488_v28  ;;  %v569_v18 = vmul.f32 0.03125, %v491_v29 }
 0x15d   : > { %v3489_v52 = vpop.eup %3488  ;;  %3500 = vrsqrt.f32 %v599_v61 }
 0x15e   : > { %v657_v44 = vmul.f32 %v3489_v52, %v3946_v10  ;;  %v600_v42 = vadd.f32 1e-05, %v568_v15  ;;  %v601_v40 = vadd.f32 1e-05, %v569_v18 }
 0x15f   : > { %v494_v20 = vpop.xlane.xlu1 %493  ;;  %v497_v46 = vpop.xlane.xlu0 %496 }
 0x160   : > { %v570_v56 = vmul.f32 0.03125, %v494_v20  ;;  %v571_v47 = vmul.f32 0.03125, %v497_v46  ;;  %v695_v48 = vmul.f32 %v4202_v16, %v657_v44  ;;  %3502 = vrsqrt.f32 %v600_v42 }
 0x161   : > { %v3491_v3 = vpop.eup %3490  ;;  %3504 = vrsqrt.f32 %v601_v40 }
 0x162   : > { %v3493_v63 = vpop.eup %3492  ;;  %v602_v14 = vadd.f32 1e-05, %v570_v56  ;;  %v603_v60 = vadd.f32 1e-05, %v571_v47  ;;  %v733_v10 = vadd.f32 %v4208_v50, %v695_v48  ;;  %v658_v61 = vmul.f32 %v3491_v3, %v3956_v26 }
 0x163   : > { %v500_v28 = vpop.xlane.xlu1 %499  ;;  %v503_v29 = vpop.xlane.xlu0 %502  ;;  %v659_v15 = vmul.f32 %v3493_v63, %v3949_v11 }
 0x164   : > { %v572_v52 = vmul.f32 0.03125, %v500_v28  ;;  %v573_v18 = vmul.f32 0.03125, %v503_v29  ;;  %v770_v20 = vsel %vm271_vm0, %v733_v10, 0  ;;  %3506 = vrsqrt.f32 %v602_v14 }
 0x165   : > { %v3495_v46 = vpop.eup %3494  ;;  %v4215_v44 = vand.u32 4294901760, %v770_v20  ;;  %v696_v56 = vmul.f32 %v4202_v16, %v658_v61  ;;  %v697_v47 = vmul.f32 %v4202_v16, %v659_v15  ;;  %3508 = vrsqrt.f32 %v603_v60 }
 0x166   : > { %v3497_v48 = vpop.eup %3496  ;;  %v604_v26 = vadd.f32 1e-05, %v572_v52  ;;  %v605_v42 = vadd.f32 1e-05, %v573_v18  ;;  %v660_v3 = vmul.f32 %v3495_v46, %v3959_v27 }
 0x167   : > { %5249 = vst [vmem:[#allocation10_spill] sm:$0xff] %v4215_v44  ;;  %v506_v11 = vpop.xlane.xlu1 %505  ;;  %3152 = vmatprep.mubr.f32.mxu1 %v4215_v44  ;;  %v509_v40 = vpop.xlane.xlu0 %508  ;;  %v734_v63 = vadd.f32 %v4208_v50, %v696_v56  ;;  %v735_v14 = vadd.f32 %v4208_v50, %v697_v47  ;;  %v4224_v10 = vsub.f32 %v770_v20, %v4215_v44 }
 0x168   : > { %v661_v61 = vmul.f32 %v3497_v48, %v3968_v2  ;;  %3510 = vrsqrt.f32 %v604_v26  ;;  %v574_v28 = vmul.f32 0.03125, %v506_v11  ;;  %v575_v60 = vmul.f32 0.03125, %v509_v40 }
 0x169   : > { %v698_v29 = vmul.f32 %v4202_v16, %v660_v3  ;;  %v3499_v15 = vpop.eup %3498  ;;  %3512 = vrsqrt.f32 %v605_v42  ;;  %v773_v27 = vsel %vm271_vm0, %v734_v63, 0  ;;  %v776_v52 = vsel %vm271_vm0, %v735_v14, 0 }
 0x16a   : > { %v5175_v18 = vand.u32 4294901760, %v4224_v10  ;;  %v606_v46 = vadd.f32 1e-05, %v574_v28  ;;  %v607_v56 = vadd.f32 1e-05, %v575_v60  ;;  %v4231_v47 = vand.u32 4294901760, %v773_v27  ;;  %v3501_v40 = vpop.eup %3500 }
 0x16b   : > { %v4233_v20 = vand.u32 4294901760, %v776_v52  ;;  %v512_v2 = vpop.xlane.xlu1 %511  ;;  %v515_v48 = vpop.xlane.xlu0 %514  ;;  %v736_v42 = vadd.f32 %v4208_v50, %v698_v29  ;;  %v699_v3 = vmul.f32 %v4202_v16, %v661_v61  ;;  %v662_v11 = vmul.f32 %v3499_v15, %v3971_v5 }
 0x16c   : > { %5250 = vst [vmem:[#allocation11_spill] sm:$0xff] %v4231_v47  ;;  %v937_v26 = vsub.f32 %v4224_v10, %v5175_v18  ;;  %3514 = vrsqrt.f32 %v606_v46  ;;  %v576_v63 = vmul.f32 0.03125, %v512_v2  ;;  %3153 = vmatmul.mubr.f32.vlgmr.msra.gmra.mxu1 %v4231_v47  ;;  %v577_v14 = vmul.f32 0.03125, %v515_v48 }
 0x16d   : > { %5251 = vst [vmem:[#allocation12_spill] sm:$0xff] %v4233_v20  ;;  %v4243_v28 = vsub.f32 %v773_v27, %v4231_v47  ;;  %3516 = vrsqrt.f32 %v607_v56  ;;  %3155 = vmatprep.mubr.f32.mxu1 %v4233_v20  ;;  %v779_v18 = vsel %vm271_vm0, %v736_v42, 0  ;;  %v737_v29 = vadd.f32 %v4208_v50, %v699_v3  ;;  %3257 = vmatpush3.msra.mxu1 %v4038_v12  ;;  %v3503_v3 = vpop.eup %3502 }
 0x16e   : > { %v938_v60 = vand.u32 4294901760, %v937_v26  ;;  %v608_v5 = vadd.f32 1e-05, %v576_v63  ;;  %v609_v61 = vadd.f32 1e-05, %v577_v14  ;;  %v4249_v15 = vand.u32 4294901760, %v779_v18  ;;  %3258 = vmatprep.subr.mxu1 %v4050_v22 }
 0x16f   : > { %v518_v27 = vpop.xlane.xlu1 %517  ;;  %v521_v56 = vpop.xlane.xlu0 %520  ;;  %v782_v2 = vsel %vm271_vm0, %v737_v29, 0  ;;  %v700_v48 = vmul.f32 %v4202_v16, %v662_v11  ;;  %v4256_v26 = vsub.f32 %v776_v52, %v4233_v20  ;;  %v663_v42 = vmul.f32 %v3501_v40, %v3980_v55  ;;  %3259 = vmatpush3.msra.mxu1 %v4050_v22 }
 0x170   : > { %5252 = vst [vmem:[#allocation13_spill] sm:$0xff] %v4249_v15  ;;  %3096 = vmatprep.mubr.f32.mxu0 %v938_v60  ;;  %3518 = vrsqrt.f32 %v608_v5  ;;  %v578_v63 = vmul.f32 0.03125, %v518_v27  ;;  %3156 = vmatmul.mubr.f32.gmra.mxu1 %v4249_v15  ;;  %v579_v14 = vmul.f32 0.03125, %v521_v56  ;;  %v4261_v46 = vand.u32 4294901760, %v782_v2  ;;  %v3505_v60 = vpop.eup %3504 }
 0x171   : > { %3260 = vmatprep.subr.mxu1 %v4071_v38  ;;  %3520 = vrsqrt.f32 %v609_v61  ;;  %v5254_v11 = vand.u32 4294901760, %v4243_v28  ;;  %v738_v55 = vadd.f32 %v4208_v50, %v700_v48  ;;  %v4270_v29 = vpop.eup %3506  ;;  %v701_v56 = vmul.f32 %v4202_v16, %v663_v42 }
 0x172   : > { %5253 = vst [vmem:[#allocation14_spill] sm:$0xff] %v4261_v46  ;;  %3261 = vmatpush3.msra.mxu1 %v4071_v38  ;;  %v610_v5 = vadd.f32 1e-05, %v578_v63  ;;  %v611_v27 = vadd.f32 1e-05, %v579_v14  ;;  %3158 = vmatprep.mubr.f32.mxu1 %v4261_v46  ;;  %v4275_v61 = vsub.f32 %v779_v18, %v4249_v15  ;;  %v5255_v44 = vand.u32 4294901760, %v4256_v26 }
 0x173   : > { %v947_v52 = vsub.f32 %v4243_v28, %v5254_v11  ;;  %3262 = vmatprep.subr.mxu1 %v4089_v8  ;;  %v4278_v11 = vpop.eup %3508  ;;  %v524_v48 = vpop.xlane.xlu1 %523  ;;  %v785_v40 = vsel %vm271_vm0, %v738_v55, 0  ;;  %v664_v14 = vmul.f32 %v3503_v3, %v3983_v9  ;;  %v739_v55 = vadd.f32 %v4208_v50, %v701_v56 }
 0x174   : > { %v527_v47 = vpop.xlane.xlu0 %526  ;;  %v957_v63 = vsub.f32 %v4256_v26, %v5255_v44  ;;  %3263 = vmatpush3.msra.mxu1 %v4089_v8  ;;  %3522 = vrsqrt.f32 %v610_v5  ;;  %v580_v18 = vmul.f32 0.03125, %v524_v48  ;;  %v4286_v42 = vand.u32 4294901760, %v785_v40 }
 0x175   : > { %v948_v20 = vand.u32 4294901760, %v947_v52  ;;  %v581_v15 = vmul.f32 0.03125, %v527_v47  ;;  %3368 = vmatprep.subr.mxu1 %v4038_v12  ;;  %v4289_v31 = vpop.eup %3510  ;;  %3524 = vrsqrt.f32 %v611_v27  ;;  %v5188_v44 = vand.u32 4294901760, %v4275_v61 }
 0x176   : > { %5256 = vst [vmem:[#allocation15_spill] sm:$0xff] %v4286_v42  ;;  %v958_v52 = vand.u32 4294901760, %v957_v63  ;;  %v4293_v36 = vpop.eup %3512  ;;  %v612_v9 = vadd.f32 1e-05, %v580_v18  ;;  %3159 = vmatmul.mubr.f32.gmra.mxu1 %v4286_v42  ;;  %v702_v47 = vmul.f32 %v4202_v16, %v664_v14  ;;  %v4299_v5 = vsub.f32 %v782_v2, %v4261_v46 }
 0x177   : > { %3097 = vmatmul.mubr.f32.vlgmr.msra.gmra.mxu0 %v948_v20  ;;  %v613_v3 = vadd.f32 1e-05, %v581_v15  ;;  %v788_v20 = vsel %vm271_vm0, %v739_v55, 0  ;;  %v530_v27 = vpop.xlane.xlu1 %529  ;;  %v967_v56 = vsub.f32 %v4275_v61, %v5188_v44  ;;  %v665_v63 = vmul.f32 %v3505_v60, %v3992_v7 }
 0x178   : > { %3201 = vmatpush3.msra.mxu0 %v4048_v19  ;;  %3099 = vmatprep.mubr.f32.mxu0 %v958_v52  ;;  %v533_v48 = vpop.xlane.xlu0 %532  ;;  %v4307_v18 = vsub.f32 %v785_v40, %v4286_v42  ;;  %3526 = vrsqrt.f32 %v612_v9  ;;  %v4310_v19 = vand.u32 4294901760, %v788_v20  ;;  %v582_v15 = vmul.f32 0.03125, %v530_v27 }
 0x179   : > { %3202 = vmatprep.subr.mxu0 %v4069_v33  ;;  %v740_v2 = vadd.f32 %v4208_v50, %v702_v47  ;;  %v4314_v14 = vpop.eup %3514  ;;  %3528 = vrsqrt.f32 %v613_v3  ;;  %v968_v52 = vand.u32 4294901760, %v967_v56  ;;  %v583_v55 = vmul.f32 0.03125, %v533_v48 }
 0x17a   : > { %5257 = vst [vmem:[#allocation16_spill] sm:$0xff] %v4310_v19  ;;  %3203 = vmatpush3.msra.mxu0 %v4069_v33  ;;  %v5189_v7 = vand.u32 4294901760, %v4299_v5  ;;  %v4318_v60 = vpop.eup %3516  ;;  %3161 = vmatprep.mubr.f32.mxu1 %v4310_v19  ;;  %v614_v40 = vadd.f32 1e-05, %v582_v15  ;;  %v703_v47 = vmul.f32 %v4202_v16, %v665_v63  ;;  %v5190_v33 = vand.u32 4294901760, %v4307_v18 }
 0x17b   : > { %3204 = vmatprep.subr.mxu0 %v4087_v54  ;;  %v791_v9 = vsel %vm271_vm0, %v740_v2, 0  ;;  %3100 = vmatmul.mubr.f32.gmra.mxu0 %v968_v52  ;;  %v615_v27 = vadd.f32 1e-05, %v583_v55  ;;  %v536_v48 = vpop.xlane.xlu1 %535  ;;  %v666_v15 = vmul.f32 %v4270_v29, %v3995_v13 }
 0x17c   : > { %3205 = vmatpush3.msra.mxu0 %v4087_v54  ;;  %v4325_v3 = vand.u32 4294901760, %v791_v9  ;;  %v977_v56 = vsub.f32 %v4299_v5, %v5189_v7  ;;  %v539_v44 = vpop.xlane.xlu0 %538  ;;  %3530 = vrsqrt.f32 %v614_v40  ;;  %v741_v63 = vadd.f32 %v4208_v50, %v703_v47 }
 0x17d   : > { %3206 = vmatprep.subr.mxu0 %v4107_v37  ;;  %v584_v2 = vmul.f32 0.03125, %v536_v48  ;;  %v987_v54 = vsub.f32 %v4307_v18, %v5190_v33  ;;  %v4338_v52 = vpop.eup %3518  ;;  %3532 = vrsqrt.f32 %v615_v27  ;;  %v704_v13 = vmul.f32 %v4202_v16, %v666_v15 }
 0x17e   : > { %5258 = vst [vmem:[#allocation17_spill] sm:$0xff] %v4325_v3  ;;  %3207 = vmatpush3.msra.mxu0 %v4107_v37  ;;  %3162 = vmatmul.mubr.f32.gmra.mxu1 %v4325_v3  ;;  %v978_v55 = vand.u32 4294901760, %v977_v56  ;;  %v585_v29 = vmul.f32 0.03125, %v539_v44  ;;  %v4343_v40 = vpop.eup %3520  ;;  %v794_v47 = vsel %vm271_vm0, %v741_v63, 0  ;;  %v4347_v33 = vsub.f32 %v788_v20, %v4310_v19 }
 0x17f   : > { %3312 = vmatprep.subr.mxu0 %v4066_v32  ;;  %v616_v48 = vadd.f32 1e-05, %v584_v2  ;;  %v988_v7 = vand.u32 4294901760, %v987_v54  ;;  %v4349_v37 = vand.u32 4294901760, %v794_v47  ;;  %v742_v27 = vadd.f32 %v4208_v50, %v704_v13  ;;  %v542_v15 = vpop.xlane.xlu1 %541 }
 0x180   : > { %3102 = vmatprep.mubr.f32.mxu0 %v978_v55  ;;  %v617_v56 = vadd.f32 1e-05, %v585_v29  ;;  %v667_v44 = vmul.f32 %v4278_v11, %v4004_v1  ;;  %v5193_v42 = vand.u32 4294901760, %v4347_v33  ;;  %v586_v63 = vmul.f32 0.03125, %v542_v15  ;;  %v545_v20 = vpop.xlane.xlu0 %544 }
 0x181   : > { %5259 = vst [vmem:[#allocation18_spill] sm:$0xff] %v4349_v37  ;;  %3534 = vrsqrt.f32 %v616_v48  ;;  %3103 = vmatmul.mubr.f32.gmra.mxu0 %v988_v7  ;;  %v4356_v2 = vsub.f32 %v791_v9, %v4325_v3  ;;  %v4358_v54 = vpop.eup %3522  ;;  %3164 = vmatprep.mubr.f32.mxu1 %v4349_v37  ;;  %v797_v55 = vsel %vm271_vm0, %v742_v27, 0  ;;  %v668_v1 = vmul.f32 %v4289_v31, %v4007_v17 }
 0x182   : > { %3536 = vrsqrt.f32 %v617_v56  ;;  %v705_v13 = vmul.f32 %v4202_v16, %v667_v44  ;;  %v4365_v11 = vpop.eup %3524  ;;  %v4367_v7 = vand.u32 4294901760, %v797_v55  ;;  %v997_v9 = vsub.f32 %v4347_v33, %v5193_v42 }
 0x183   : > { %v618_v29 = vadd.f32 1e-05, %v586_v63  ;;  %v5198_v48 = vand.u32 4294901760, %v4356_v2  ;;  %v706_v27 = vmul.f32 %v4202_v16, %v668_v1  ;;  %v587_v56 = vmul.f32 0.03125, %v545_v20  ;;  %v548_v17 = vpop.xlane.xlu1 %547 }
 0x184   : > { %5260 = vst [vmem:[#allocation19_spill] sm:$0xff] %v4367_v7  ;;  %v743_v15 = vadd.f32 %v4208_v50, %v705_v13  ;;  %v4376_v44 = vsub.f32 %v794_v47, %v4349_v37  ;;  %3165 = vmatmul.mubr.f32.gmra.mxu1 %v4367_v7  ;;  %v998_v31 = vand.u32 4294901760, %v997_v9  ;;  %v669_v63 = vmul.f32 %v4293_v36, %v4016_v43  ;;  %v551_v46 = vpop.xlane.xlu0 %550 }
 0x185   : > { %3538 = vrsqrt.f32 %v618_v29  ;;  %v1007_v42 = vsub.f32 %v4356_v2, %v5198_v48  ;;  %v4384_v3 = vpop.eup %3526  ;;  %v744_v20 = vadd.f32 %v4208_v50, %v706_v27  ;;  %v619_v47 = vadd.f32 1e-05, %v587_v56 }
 0x186   : > { %v800_v13 = vsel %vm271_vm0, %v743_v15, 0  ;;  %v5203_v1 = vand.u32 4294901760, %v4376_v44  ;;  %v4389_v37 = vpop.eup %3528  ;;  %3105 = vmatprep.mubr.f32.mxu0 %v998_v31  ;;  %v707_v48 = vmul.f32 %v4202_v16, %v669_v63  ;;  %v588_v19 = vmul.f32 0.03125, %v548_v17 }
 0x187   : > { %v4391_v9 = vand.u32 4294901760, %v800_v13  ;;  %v1008_v29 = vand.u32 4294901760, %v1007_v42  ;;  %v803_v43 = vsel %vm271_vm0, %v744_v20, 0  ;;  %3540 = vrsqrt.f32 %v619_v47 }
 0x188   : > { %v1017_v36 = vsub.f32 %v4376_v44, %v5203_v1  ;;  %v4399_v15 = vsub.f32 %v797_v55, %v4367_v7  ;;  %v4402_v27 = vand.u32 4294901760, %v803_v43  ;;  %v745_v42 = vadd.f32 %v4208_v50, %v707_v48  ;;  %v554_v1 = vpop.xlane.xlu1 %553 }
 0x189   : > { %5261 = vst [vmem:[#allocation20_spill] sm:$0xff] %v4391_v9  ;;  %3167 = vmatprep.mubr.f32.mxu1 %v4391_v9  ;;  %3106 = vmatmul.mubr.f32.gmra.mxu0 %v1008_v29  ;;  %v620_v56 = vadd.f32 1e-05, %v588_v19  ;;  %v670_v17 = vmul.f32 %v4314_v14, %v4019_v21  ;;  %v4407_v31 = vpop.eup %3530  ;;  %v589_v47 = vmul.f32 0.03125, %v551_v46  ;;  %v4411_v55 = vsub.f32 %v800_v13, %v4391_v9  ;;  %v557_v9 = vpop.xlane.xlu0 %556 }
 0x18a   : > { %5262 = vst [vmem:[#allocation21_spill] sm:$0xff] %v4399_v15  ;;  %5263 = vst [vmem:[#allocation22_spill] sm:$0xff] %v4402_v27  ;;  %v1018_v63 = vand.u32 4294901760, %v1017_v36  ;;  %v5208_v20 = vand.u32 4294901760, %v4399_v15  ;;  %v4413_v7 = vpop.eup %3532  ;;  %3168 = vmatmul.mubr.f32.gmra.mxu1 %v4402_v27  ;;  %v806_v48 = vsel %vm271_vm0, %v745_v42, 0  ;;  %v671_v21 = vmul.f32 %v4318_v60, %v4028_v59 }
 0x18b   : > { %5264 = vst [vmem:[#allocation23_spill] sm:$0xff] %v4411_v55  ;;  %3542 = vrsqrt.f32 %v620_v56  ;;  %v708_v19 = vmul.f32 %v4202_v16, %v670_v17  ;;  %v4420_v14 = vand.u32 4294901760, %v806_v48  ;;  %v621_v13 = vadd.f32 1e-05, %v589_v47 }
 0x18c   : > { %3108 = vmatprep.mubr.f32.mxu0 %v1018_v63  ;;  %v1027_v46 = vsub.f32 %v4399_v15, %v5208_v20  ;;  %v5213_v29 = vand.u32 4294901760, %v4411_v55  ;;  %v709_v42 = vmul.f32 %v4202_v16, %v671_v21  ;;  %v590_v56 = vmul.f32 0.03125, %v554_v1 }
 0x18d   : > { %v746_v36 = vadd.f32 %v4208_v50, %v708_v19  ;;  %v4429_v17 = vsub.f32 %v803_v43, %v4402_v27  ;;  %3170 = vmatprep.mubr.f32.mxu1 %v4420_v14  ;;  %3544 = vrsqrt.f32 %v621_v13  ;;  %v672_v47 = vmul.f32 %v4338_v52, %v4031_v25 }
 0x18e   : > { %v4431_v59 = vpop.eup %3534  ;;  %v1028_v60 = vand.u32 4294901760, %v1027_v46  ;;  %v1037_v63 = vsub.f32 %v4411_v55, %v5213_v29  ;;  %v747_v43 = vadd.f32 %v4208_v50, %v709_v42  ;;  %v622_v21 = vadd.f32 1e-05, %v590_v56  ;;  %v560_v29 = vpop.xlane.xlu1 %559 }
 0x18f   : > { %v4439_v19 = vpop.eup %3536  ;;  %v809_v1 = vsel %vm271_vm0, %v746_v36, 0  ;;  %v5220_v20 = vand.u32 4294901760, %v4429_v17  ;;  %v710_v13 = vmul.f32 %v4202_v16, %v672_v47  ;;  %v591_v15 = vmul.f32 0.03125, %v557_v9 }
 0x190   : > { %3109 = vmatmul.mubr.f32.gmra.mxu0 %v1028_v60  ;;  %v4444_v27 = vand.u32 4294901760, %v809_v1  ;;  %v1038_v46 = vand.u32 4294901760, %v1037_v63  ;;  %v812_v55 = vsel %vm271_vm0, %v747_v43, 0  ;;  %3546 = vrsqrt.f32 %v622_v21 }
 0x191   : > { %v1047_v25 = vsub.f32 %v4429_v17, %v5220_v20  ;;  %v4452_v52 = vsub.f32 %v806_v48, %v4420_v14  ;;  %v4457_v42 = vand.u32 4294901760, %v812_v55  ;;  %v748_v9 = vadd.f32 %v4208_v50, %v710_v13 }
 0x192   : > { %v4454_v36 = vpop.eup %3538  ;;  %3171 = vmatmul.mubr.f32.gmra.mxu1 %v4444_v27  ;;  %3111 = vmatprep.mubr.f32.mxu0 %v1038_v46  ;;  %v623_v56 = vadd.f32 1e-05, %v591_v15  ;;  %v673_v60 = vmul.f32 %v4343_v40, %v4054_v23  ;;  %v592_v43 = vmul.f32 0.03125, %v560_v29  ;;  %v4464_v48 = vsub.f32 %v809_v1, %v4444_v27 }
 0x193   : > { %v1048_v63 = vand.u32 4294901760, %v1047_v25  ;;  %v5218_v47 = vand.u32 4294901760, %v4452_v52  ;;  %3173 = vmatprep.mubr.f32.mxu1 %v4457_v42  ;;  %v815_v21 = vsel %vm271_vm0, %v748_v9, 0  ;;  %v674_v15 = vmul.f32 %v4358_v54, %v4057_v0 }
 0x194   : > { %3548 = vrsqrt.f32 %v623_v56  ;;  %v711_v46 = vmul.f32 %v4202_v16, %v673_v60  ;;  %v4471_v13 = vpop.eup %3540  ;;  %v4473_v23 = vand.u32 4294901760, %v815_v21  ;;  %v624_v29 = vadd.f32 1e-05, %v592_v43 }
 0x195   : > { %3112 = vmatmul.mubr.f32.gmra.mxu0 %v1048_v63  ;;  %v1057_v40 = vsub.f32 %v4452_v52, %v5218_v47  ;;  %v5216_v1 = vand.u32 4294901760, %v4464_v48  ;;  %v712_v9 = vmul.f32 %v4202_v16, %v674_v15  ;;  %v4482_v56 = vsub.f32 %v812_v55, %v4457_v42 }
 0x196   : > { %v749_v25 = vadd.f32 %v4208_v50, %v711_v46  ;;  %v675_v0 = vmul.f32 %v4365_v11, %v4093_v58  ;;  %3174 = vmatmul.mubr.f32.gmra.mxu1 %v4473_v23  ;;  %3550 = vrsqrt.f32 %v624_v29  ;;  %v4491_v63 = vsub.f32 %v815_v21, %v4473_v23 }
 0x197   : > { %v1058_v54 = vand.u32 4294901760, %v1057_v40  ;;  %v1067_v60 = vsub.f32 %v4464_v48, %v5216_v1  ;;  %v750_v55 = vadd.f32 %v4208_v50, %v712_v9  ;;  %v5217_v15 = vand.u32 4294901760, %v4482_v56 }
 0x198   : > { %v4493_v43 = vpop.eup %3542  ;;  %v818_v46 = vsel %vm271_vm0, %v749_v25, 0  ;;  %v713_v58 = vmul.f32 %v4202_v16, %v675_v0  ;;  %v5219_v29 = vand.u32 4294901760, %v4491_v63  ;;  %v676_v21 = vmul.f32 %v4384_v3, %v4096_v24 }
 0x199   : > { %3114 = vmatprep.mubr.f32.mxu0 %v1058_v54  ;;  %v4499_v11 = vand.u32 4294901760, %v818_v46  ;;  %v1068_v40 = vand.u32 4294901760, %v1067_v60  ;;  %v821_v1 = vsel %vm271_vm0, %v750_v55, 0  ;;  %v1077_v25 = vsub.f32 %v4482_v56, %v5217_v15 }
 0x19a   : > { %v751_v9 = vadd.f32 %v4208_v50, %v713_v58  ;;  %v677_v0 = vmul.f32 %v4389_v37, %v4121_v34  ;;  %v4511_v54 = vpop.eup %3544  ;;  %v4514_v60 = vand.u32 4294901760, %v821_v1  ;;  %v1087_v24 = vsub.f32 %v4491_v63, %v5219_v29 }
 0x19b   : > { %3176 = vmatprep.mubr.f32.mxu1 %v4499_v11  ;;  %3115 = vmatmul.mubr.f32.gmra.mxu0 %v1068_v40  ;;  %v714_v3 = vmul.f32 %v4202_v16, %v676_v21  ;;  %v4521_v55 = vsub.f32 %v818_v46, %v4499_v11  ;;  %v1078_v58 = vand.u32 4294901760, %v1077_v25  ;;  %v678_v37 = vmul.f32 %v4407_v31, %v4124_v35 }
 0x19c   : > { %5265 = vst [vmem:[#allocation24_spill] sm:$0xff] %v4514_v60  ;;  %v824_v15 = vsel %vm271_vm0, %v751_v9, 0  ;;  %v715_v34 = vmul.f32 %v4202_v16, %v677_v0  ;;  %3177 = vmatmul.mubr.f32.gmra.mxu1 %v4514_v60  ;;  %v1088_v47 = vand.u32 4294901760, %v1087_v24  ;;  %v4536_v25 = vsub.f32 %v821_v1, %v4514_v60 }
 0x19d   : > { %v4528_v40 = vand.u32 4294901760, %v824_v15  ;;  %v752_v29 = vadd.f32 %v4208_v50, %v714_v3  ;;  %v5221_v21 = vand.u32 4294901760, %v4521_v55  ;;  %v4532_v20 = vpop.eup %3546  ;;  %3117 = vmatprep.mubr.f32.mxu0 %v1078_v58  ;;  %v716_v9 = vmul.f32 %v4202_v16, %v678_v37 }
 0x19e   : > { %v753_v46 = vadd.f32 %v4208_v50, %v715_v34  ;;  %v679_v35 = vmul.f32 %v4413_v7, %v4137_v4  ;;  %v680_v1 = vmul.f32 %v4431_v59, %v4140_v6  ;;  %v5222_v4 = vand.u32 4294901760, %v4536_v25 }
 0x19f   : > { %5266 = vst [vmem:[#allocation25_spill] sm:$0xff] %v4528_v40  ;;  %3179 = vmatprep.mubr.f32.mxu1 %v4528_v40  ;;  %3118 = vmatmul.mubr.f32.gmra.mxu0 %v1088_v47  ;;  %v827_v31 = vsel %vm271_vm0, %v752_v29, 0  ;;  %v1097_v0 = vsub.f32 %v4521_v55, %v5221_v21  ;;  %v4547_v24 = vsub.f32 %v824_v15, %v4528_v40 }
 0x1a0   : > { %v4551_v3 = vand.u32 4294901760, %v827_v31  ;;  %v830_v58 = vsel %vm271_vm0, %v753_v46, 0  ;;  %v754_v7 = vadd.f32 %v4208_v50, %v716_v9  ;;  %v717_v15 = vmul.f32 %v4202_v16, %v679_v35 }
 0x1a1   : > { %v4556_v47 = vpop.eup %3548  ;;  %v1098_v29 = vand.u32 4294901760, %v1097_v0  ;;  %v4558_v34 = vand.u32 4294901760, %v830_v58  ;;  %v5229_v37 = vand.u32 4294901760, %v4547_v24  ;;  %v1107_v6 = vsub.f32 %v4536_v25, %v5222_v4 }
 0x1a2   : > { %5267 = vst [vmem:[#allocation26_spill] sm:$0xff] %v4551_v3  ;;  %3180 = vmatmul.mubr.f32.gmra.mxu1 %v4551_v3  ;;  %v833_v59 = vsel %vm271_vm0, %v754_v7, 0  ;;  %v4568_v46 = vsub.f32 %v827_v31, %v4551_v3  ;;  %v718_v9 = vmul.f32 %v4202_v16, %v680_v1  ;;  %v755_v21 = vadd.f32 %v4208_v50, %v717_v15 }
 0x1a3   : > { %3120 = vmatprep.mubr.f32.mxu0 %v1098_v29  ;;  %3182 = vmatprep.mubr.f32.mxu1 %v4558_v34  ;;  %v4572_v0 = vand.u32 4294901760, %v833_v59  ;;  %v1117_v35 = vsub.f32 %v4547_v24, %v5229_v37  ;;  %v4579_v4 = vsub.f32 %v830_v58, %v4558_v34  ;;  %v4581_v7 = vpop.eup %3550  ;;  %v1108_v31 = vand.u32 4294901760, %v1107_v6 }
 0x1a4   : > { %v5230_v3 = vand.u32 4294901760, %v4568_v46  ;;  %v756_v1 = vadd.f32 %v4208_v50, %v718_v9  ;;  %v681_v29 = vmul.f32 %v4439_v19, %v4149_v45  ;;  %v836_v60 = vsel %vm271_vm0, %v755_v21, 0 }
 0x1a5   : > { %5268 = vst [vmem:[#allocation27_spill] sm:$0xff] %v4572_v0  ;;  %v1118_v40 = vand.u32 4294901760, %v1117_v35  ;;  %v5231_v37 = vand.u32 4294901760, %v4579_v4  ;;  %v4590_v15 = vsub.f32 %v833_v59, %v4572_v0  ;;  %3121 = vmatmul.mubr.f32.gmra.mxu0 %v1108_v31  ;;  %v4593_v58 = vand.u32 4294901760, %v836_v60 }
 0x1a6   : > { %3183 = vmatmul.mubr.f32.gmra.mxu1 %v4572_v0  ;;  %v1127_v6 = vsub.f32 %v4568_v46, %v5230_v3  ;;  %v839_v9 = vsel %vm271_vm0, %v756_v1, 0  ;;  %v719_v45 = vmul.f32 %v4202_v16, %v681_v29  ;;  %v682_v35 = vmul.f32 %v4454_v36, %v4152_v39 }
 0x1a7   : > { %3123 = vmatprep.mubr.f32.mxu0 %v1118_v40  ;;  %v4600_v19 = vand.u32 4294901760, %v839_v9  ;;  %v1137_v21 = vsub.f32 %v4579_v4, %v5231_v37  ;;  %v1146_v59 = vand.u32 4294901760, %v4590_v15  ;;  %3185 = vmatprep.mubr.f32.mxu1 %v4593_v58  ;;  %v4611_v1 = vsub.f32 %v836_v60, %v4593_v58 }
 0x1a8   : > { %v1128_v31 = vand.u32 4294901760, %v1127_v6  ;;  %v757_v3 = vadd.f32 %v4208_v50, %v719_v45  ;;  %v683_v40 = vmul.f32 %v4471_v13, %v4162_v49  ;;  %v720_v0 = vmul.f32 %v4202_v16, %v682_v35 }
 0x1a9   : > { %v1138_v29 = vand.u32 4294901760, %v1137_v21  ;;  %v1147_v37 = vsub.f32 %v4590_v15, %v1146_v59  ;;  %v4620_v39 = vsub.f32 %v839_v9, %v4600_v19  ;;  %v5234_v60 = vand.u32 4294901760, %v4611_v1 }
 0x1aa   : > { %3124 = vmatmul.mubr.f32.gmra.mxu0 %v1128_v31  ;;  %3186 = vmatmul.mubr.f32.gmra.mxu1 %v4600_v19  ;;  %v842_v36 = vsel %vm271_vm0, %v757_v3, 0  ;;  %v721_v6 = vmul.f32 %v4202_v16, %v683_v40  ;;  %v684_v49 = vmul.f32 %v4493_v43, %v4165_v41  ;;  %v758_v21 = vadd.f32 %v4208_v50, %v720_v0 }
 0x1ab   : > { %3126 = vmatprep.mubr.f32.mxu0 %v1138_v29  ;;  %v4628_v13 = vand.u32 4294901760, %v842_v36  ;;  %v1148_v45 = vand.u32 4294901760, %v1147_v37  ;;  %v5235_v9 = vand.u32 4294901760, %v4620_v39  ;;  %v1157_v35 = vsub.f32 %v4611_v1, %v5234_v60 }
 0x1ac   : > { %v759_v3 = vadd.f32 %v4208_v50, %v721_v6  ;;  %v722_v31 = vmul.f32 %v4202_v16, %v684_v49  ;;  %v685_v40 = vmul.f32 %v4511_v54, %v4174_v30  ;;  %v845_v41 = vsel %vm271_vm0, %v758_v21, 0 }
 0x1ad   : > { %3188 = vmatprep.mubr.f32.mxu1 %v4628_v13  ;;  %v1167_v43 = vsub.f32 %v4620_v39, %v5235_v9  ;;  %v4645_v37 = vsub.f32 %v842_v36, %v4628_v13  ;;  %v686_v0 = vmul.f32 %v4532_v20, %v4177_v53  ;;  %v4649_v29 = vand.u32 4294901760, %v845_v41 }
 0x1ae   : > { %3127 = vmatmul.mubr.f32.gmra.mxu0 %v1148_v45  ;;  %v1158_v6 = vand.u32 4294901760, %v1157_v35  ;;  %v848_v30 = vsel %vm271_vm0, %v759_v3, 0  ;;  %v760_v54 = vadd.f32 %v4208_v50, %v722_v31  ;;  %v723_v9 = vmul.f32 %v4202_v16, %v685_v40 }
 0x1af   : > { %v4653_v49 = vand.u32 4294901760, %v848_v30  ;;  %v1168_v21 = vand.u32 4294901760, %v1167_v43  ;;  %v5237_v60 = vand.u32 4294901760, %v4645_v37  ;;  %3189 = vmatmul.mubr.f32.gmra.mxu1 %v4649_v29  ;;  %v4660_v20 = vsub.f32 %v845_v41, %v4649_v29 }
 0x1b0   : > { %3129 = vmatprep.mubr.f32.mxu0 %v1158_v6  ;;  %v851_v53 = vsel %vm271_vm0, %v760_v54, 0  ;;  %v724_v36 = vmul.f32 %v4202_v16, %v686_v0  ;;  %v687_v45 = vmul.f32 %v4556_v47, %v4186_v62  ;;  %v761_v31 = vadd.f32 %v4208_v50, %v723_v9 }
 0x1b1   : > { %3191 = vmatprep.mubr.f32.mxu1 %v4653_v49  ;;  %v4666_v35 = vand.u32 4294901760, %v851_v53  ;;  %v1177_v3 = vsub.f32 %v4645_v37, %v5237_v60  ;;  %v4673_v40 = vsub.f32 %v848_v30, %v4653_v49  ;;  %v5236_v41 = vand.u32 4294901760, %v4660_v20 }
 0x1b2   : > { %3130 = vmatmul.mubr.f32.gmra.mxu0 %v1168_v21  ;;  %v762_v43 = vadd.f32 %v4208_v50, %v724_v36  ;;  %v725_v62 = vmul.f32 %v4202_v16, %v687_v45  ;;  %v688_v47 = vmul.f32 %v4581_v7, %v4189_v57  ;;  %v854_v6 = vsel %vm271_vm0, %v761_v31, 0 }
 0x1b3   : > { %v1178_v0 = vand.u32 4294901760, %v1177_v3  ;;  %v5238_v54 = vand.u32 4294901760, %v4673_v40  ;;  %v4683_v9 = vsub.f32 %v851_v53, %v4666_v35  ;;  %3192 = vmatmul.mubr.f32.gmra.mxu1 %v4666_v35  ;;  %v4686_v30 = vand.u32 4294901760, %v854_v6 }
 0x1b4   : > { %v1187_v21 = vsub.f32 %v4660_v20, %v5236_v41  ;;  %v857_v36 = vsel %vm271_vm0, %v762_v43, 0  ;;  %v763_v57 = vadd.f32 %v4208_v50, %v725_v62  ;;  %v726_v3 = vmul.f32 %v4202_v16, %v688_v47 }
 0x1b5   : > { %3132 = vmatprep.mubr.f32.mxu0 %v1178_v0  ;;  %v4693_v7 = vand.u32 4294901760, %v857_v36  ;;  %v1197_v53 = vsub.f32 %v4673_v40, %v5238_v54  ;;  %v5240_v45 = vand.u32 4294901760, %v4683_v9  ;;  %3194 = vmatprep.mubr.f32.mxu1 %v4686_v30  ;;  %v4703_v43 = vsub.f32 %v854_v6, %v4686_v30 }
 0x1b6   : > { %v1188_v31 = vand.u32 4294901760, %v1187_v21  ;;  %v860_v41 = vsel %vm271_vm0, %v763_v57, 0  ;;  %v764_v54 = vadd.f32 %v4208_v50, %v726_v3 }
 0x1b7   : > { %v1198_v62 = vand.u32 4294901760, %v1197_v53  ;;  %v4705_v0 = vand.u32 4294901760, %v860_v41  ;;  %v1207_v60 = vsub.f32 %v4683_v9, %v5240_v45  ;;  %3195 = vmatmul.mubr.f32.gmra.mxu1 %v4693_v7  ;;  %v5239_v16 = vand.u32 4294901760, %v4703_v43 }
 0x1b8   : > { %3133 = vmatmul.mubr.f32.gmra.mxu0 %v1188_v31  ;;  %v4714_v47 = vsub.f32 %v857_v36, %v4693_v7  ;;  %v863_v21 = vsel %vm271_vm0, %v764_v54, 0  ;;  %v5269_v54 = vand.u32 4294901760, %v4224_v10 }
 0x1b9   : > { %3135 = vmatprep.mubr.f32.mxu0 %v1198_v62  ;;  %3197 = vmatprep.mubr.f32.mxu1 %v4705_v0  ;;  %v1208_v6 = vand.u32 4294901760, %v1207_v60  ;;  %v4719_v57 = vsub.f32 %v860_v41, %v4705_v0  ;;  %v4721_v53 = vand.u32 4294901760, %v863_v21  ;;  %v1217_v50 = vsub.f32 %v4703_v43, %v5239_v16 }
 0x1ba   : > { %v5241_v3 = vand.u32 4294901760, %v4714_v47 }
 0x1bb   : > { %v1236_v36 = vand.u32 4294901760, %v4719_v57  ;;  %3198 = vmatmul.mubr.f32.gmra.mxu1 %v4721_v53  ;;  %v1218_v31 = vand.u32 4294901760, %v1217_v50  ;;  %v4733_v41 = vsub.f32 %v863_v21, %v4721_v53  ;;  %v5270_v50 = vand.u32 4294901760, %v4243_v28 }
 0x1bc   : > { %3136 = vmatmul.mubr.f32.gmra.mxu0 %v1208_v6  ;;  %v1227_v60 = vsub.f32 %v4714_v47, %v5241_v3  ;;  %3264 = vmatprep.mubr.f32.mxu1 %v5269_v54  ;;  %v5271_v54 = vand.u32 4294901760, %v4256_v26 }
 0x1bd   : > { %v1237_v62 = vsub.f32 %v4719_v57, %v1236_v36  ;;  %3138 = vmatprep.mubr.f32.mxu0 %v1218_v31  ;;  %v1246_v6 = vand.u32 4294901760, %v4733_v41  ;;  %v5272_v31 = vand.u32 4294901760, %v4275_v61 }
 0x1be   : > { %v1228_v16 = vand.u32 4294901760, %v1227_v60  ;;  %v5291_v60 = vand.u32 4294901760, %v4547_v24 }
 0x1bf   : > { %v1238_v45 = vand.u32 4294901760, %v1237_v62  ;;  %3265 = vmatmul.mubr.f32.vlgmr.msra.gmra.mxu1 %v5270_v50  ;;  %v1247_v21 = vsub.f32 %v4733_v41, %v1246_v6  ;;  %v5315_v62 = vld [vmem:[#allocation25_spill] sm:$0xff] }
 0x1c0   : > { %3139 = vmatmul.mubr.f32.gmra.mxu0 %v1228_v16  ;;  %3267 = vmatprep.mubr.f32.mxu1 %v5271_v54  ;;  %v5273_v16 = vand.u32 4294901760, %v4299_v5 }
 0x1c1   : > { %3141 = vmatprep.mubr.f32.mxu0 %v1238_v45  ;;  %v1248_v3 = vand.u32 4294901760, %v1247_v21  ;;  %3369 = vmatpush3.msra.mxu1 %v4038_v12  ;;  %v5274_v45 = vand.u32 4294901760, %v4307_v18  ;;  %v5275_v12 = vand.u32 4294901760, %v4347_v33 }
 0x1c2   : > { %3370 = vmatprep.subr.mxu1 %v4050_v22 }
 0x1c3   : > { %3268 = vmatmul.mubr.f32.gmra.mxu1 %v5272_v31 }
 0x1c4   : > { %3142 = vmatmul.mubr.f32.gmra.mxu0 %v1248_v3  ;;  %3270 = vmatprep.mubr.f32.mxu1 %v5273_v16  ;;  %v5290_v3 = vand.u32 4294901760, %v4536_v25 }
 0x1c5   : > { %3208 = vmatprep.mubr.f32.mxu0 %v4224_v10  ;;  %3371 = vmatpush3.msra.mxu1 %v4050_v22  ;;  %v5276_v22 = vand.u32 4294901760, %v4356_v2  ;;  %v5278_v10 = vld [vmem:[#allocation8_spill] sm:$0xff] }
 0x1c6   : > { %3372 = vmatprep.subr.mxu1 %v4071_v38 }
 0x1c7   : > { %3271 = vmatmul.mubr.f32.gmra.mxu1 %v5274_v45 }
 0x1c8   : > { %3209 = vmatmul.mubr.f32.vlgmr.msra.gmra.mxu0 %v4243_v28  ;;  %3273 = vmatprep.mubr.f32.mxu1 %v5275_v12  ;;  %v5281_v28 = vld [vmem:[#allocation23_spill] sm:$0xff] }
 0x1c9   : > { %3313 = vmatpush3.msra.mxu0 %v4066_v32  ;;  %3211 = vmatprep.mubr.f32.mxu0 %v4256_v26  ;;  %v5277_v32 = vand.u32 4294901760, %v4376_v44  ;;  %v5282_v26 = vand.u32 4294901760, %v5281_v28 }
 0x1ca   : > { %3314 = vmatprep.subr.mxu0 %v4084_v51  ;;  %3373 = vmatpush3.msra.mxu1 %v4071_v38  ;;  %v5279_v38 = vld [vmem:[#allocation21_spill] sm:$0xff] }
 0x1cb   : > { %3315 = vmatpush3.msra.mxu0 %v4084_v51  ;;  %3274 = vmatmul.mubr.f32.gmra.mxu1 %v5276_v22  ;;  %v5280_v51 = vand.u32 4294901760, %v5279_v38 }
 0x1cc   : > { %3212 = vmatmul.mubr.f32.gmra.mxu0 %v4275_v61  ;;  %3276 = vmatprep.mubr.f32.mxu1 %v5277_v32  ;;  %v5283_v61 = vld [vmem:[#allocation9_spill] sm:$0xff] }
 0x1cd   : > { %3214 = vmatprep.mubr.f32.mxu0 %v4299_v5  ;;  %3316 = vmatprep.subr.mxu0 %v5278_v10  ;;  %v5284_v5 = vand.u32 4294901760, %v4429_v17 }
 0x1ce   : > { %3374 = vmatprep.subr.mxu1 %v4089_v8  ;;  %3317 = vmatpush3.msra.mxu0 %v5278_v10 }
 0x1cf   : > { %3375 = vmatpush3.msra.mxu1 %v4089_v8  ;;  %3318 = vmatprep.subr.mxu0 %v5283_v61  ;;  %v5285_v8 = vand.u32 4294901760, %v4452_v52 }
 0x1d0   : > { %3215 = vmatmul.mubr.f32.gmra.mxu0 %v4307_v18  ;;  %3277 = vmatmul.mubr.f32.gmra.mxu1 %v5280_v51  ;;  %v5286_v18 = vand.u32 4294901760, %v4464_v48 }
 0x1d1   : > { %3217 = vmatprep.mubr.f32.mxu0 %v4347_v33  ;;  %3279 = vmatprep.mubr.f32.mxu1 %v5282_v26  ;;  %v5287_v33 = vand.u32 4294901760, %v4482_v56 }
 0x1d2   : > { %3319 = vmatpush3.msra.mxu0 %v5283_v61 }
 0x1d4   : > { %3218 = vmatmul.mubr.f32.gmra.mxu0 %v4356_v2  ;;  %3280 = vmatmul.mubr.f32.gmra.mxu1 %v5284_v5  ;;  %v5288_v2 = vand.u32 4294901760, %v4491_v63 }
 0x1d5   : > { %3220 = vmatprep.mubr.f32.mxu0 %v4376_v44  ;;  %3282 = vmatprep.mubr.f32.mxu1 %v5285_v8  ;;  %v5289_v44 = vand.u32 4294901760, %v4521_v55 }
 0x1d8   : > { %3221 = vmatmul.mubr.f32.gmra.mxu0 %v5279_v38  ;;  %3283 = vmatmul.mubr.f32.gmra.mxu1 %v5286_v18 }
 0x1d9   : > { %3223 = vmatprep.mubr.f32.mxu0 %v5281_v28  ;;  %3285 = vmatprep.mubr.f32.mxu1 %v5287_v33 }
 0x1dc   : > { %3224 = vmatmul.mubr.f32.gmra.mxu0 %v4429_v17  ;;  %3286 = vmatmul.mubr.f32.gmra.mxu1 %v5288_v2  ;;  %v5292_v17 = vand.u32 4294901760, %v4568_v46 }
 0x1dd   : > { %3226 = vmatprep.mubr.f32.mxu0 %v4452_v52  ;;  %3288 = vmatprep.mubr.f32.mxu1 %v5289_v44  ;;  %v5293_v52 = vand.u32 4294901760, %v4579_v4 }
 0x1e0   : > { %3227 = vmatmul.mubr.f32.gmra.mxu0 %v4464_v48  ;;  %3289 = vmatmul.mubr.f32.gmra.mxu1 %v5290_v3  ;;  %v5294_v48 = vand.u32 4294901760, %v4611_v1 }
 0x1e1   : > { %3229 = vmatprep.mubr.f32.mxu0 %v4482_v56  ;;  %3291 = vmatprep.mubr.f32.mxu1 %v5291_v60  ;;  %v5295_v56 = vand.u32 4294901760, %v4620_v39 }
 0x1e4   : > { %3230 = vmatmul.mubr.f32.gmra.mxu0 %v4491_v63  ;;  %3292 = vmatmul.mubr.f32.gmra.mxu1 %v5292_v17  ;;  %v5296_v63 = vand.u32 4294901760, %v4645_v37 }
 0x1e5   : > { %3232 = vmatprep.mubr.f32.mxu0 %v4521_v55  ;;  %3294 = vmatprep.mubr.f32.mxu1 %v5293_v52  ;;  %v5297_v55 = vand.u32 4294901760, %v4660_v20 }
 0x1e8   : > { %3233 = vmatmul.mubr.f32.gmra.mxu0 %v4536_v25  ;;  %3295 = vmatmul.mubr.f32.gmra.mxu1 %v1146_v59  ;;  %v5298_v25 = vand.u32 4294901760, %v4673_v40  ;;  %v5303_v59 = vld [vmem:[#allocation11_spill] sm:$0xff] }
 0x1e9   : > { %3235 = vmatprep.mubr.f32.mxu0 %v4547_v24  ;;  %3297 = vmatprep.mubr.f32.mxu1 %v5294_v48  ;;  %v5299_v24 = vand.u32 4294901760, %v4683_v9 }
 0x1ec   : > { %3236 = vmatmul.mubr.f32.gmra.mxu0 %v4568_v46  ;;  %3298 = vmatmul.mubr.f32.gmra.mxu1 %v5295_v56  ;;  %v5301_v46 = vand.u32 4294901760, %v4714_v47 }
 0x1ed   : > { %3238 = vmatprep.mubr.f32.mxu0 %v4579_v4  ;;  %3300 = vmatprep.mubr.f32.mxu1 %v5296_v63  ;;  %v5300_v4 = vand.u32 4294901760, %v4703_v43 }
 0x1f0   : > { %3239 = vmatmul.mubr.f32.gmra.mxu0 %v4590_v15  ;;  %3301 = vmatmul.mubr.f32.gmra.mxu1 %v5297_v55  ;;  %v5302_v15 = vld [vmem:[#allocation10_spill] sm:$0xff] }
 0x1f1   : > { %3241 = vmatprep.mubr.f32.mxu0 %v4611_v1  ;;  %3303 = vmatprep.mubr.f32.mxu1 %v5298_v25  ;;  %v5304_v1 = vld [vmem:[#allocation12_spill] sm:$0xff] }
 0x1f4   : > { %3242 = vmatmul.mubr.f32.gmra.mxu0 %v4620_v39  ;;  %3304 = vmatmul.mubr.f32.gmra.mxu1 %v5299_v24  ;;  %v5305_v39 = vld [vmem:[#allocation13_spill] sm:$0xff] }
 0x1f5   : > { %3244 = vmatprep.mubr.f32.mxu0 %v4645_v37  ;;  %3306 = vmatprep.mubr.f32.mxu1 %v5300_v4  ;;  %v5306_v37 = vld [vmem:[#allocation14_spill] sm:$0xff] }
 0x1f8   : > { %3245 = vmatmul.mubr.f32.gmra.mxu0 %v4660_v20  ;;  %3307 = vmatmul.mubr.f32.gmra.mxu1 %v5301_v46  ;;  %v5307_v20 = vld [vmem:[#allocation15_spill] sm:$0xff] }
 0x1f9   : > { %3247 = vmatprep.mubr.f32.mxu0 %v4673_v40  ;;  %3309 = vmatprep.mubr.f32.mxu1 %v1236_v36  ;;  %v5308_v40 = vld [vmem:[#allocation16_spill] sm:$0xff]  ;;  %v5313_v36 = vld [vmem:[#allocation22_spill] sm:$0xff] }
 0x1fc   : > { %3248 = vmatmul.mubr.f32.gmra.mxu0 %v4683_v9  ;;  %3310 = vmatmul.mubr.f32.gmra.mxu1 %v1246_v6  ;;  %v5309_v9 = vld [vmem:[#allocation17_spill] sm:$0xff]  ;;  %v5316_v6 = vld [vmem:[#allocation26_spill] sm:$0xff] }
 0x1fd   : > { %3250 = vmatprep.mubr.f32.mxu0 %v4703_v43  ;;  %3376 = vmatprep.mubr.f32.mxu1 %v5302_v15  ;;  %v5310_v43 = vld [vmem:[#allocation18_spill] sm:$0xff] }
 0x200   : > { %3251 = vmatmul.mubr.f32.gmra.mxu0 %v4714_v47  ;;  %3377 = vmatmul.mubr.f32.vlgmr.msra.gmra.mxu1 %v5303_v59  ;;  %v5311_v47 = vld [vmem:[#allocation19_spill] sm:$0xff] }
 0x201   : > { %3253 = vmatprep.mubr.f32.mxu0 %v4719_v57  ;;  %3379 = vmatprep.mubr.f32.mxu1 %v5304_v1  ;;  %v5312_v57 = vld [vmem:[#allocation20_spill] sm:$0xff] }
 0x204   : > { %3254 = vmatmul.mubr.f32.gmra.mxu0 %v4733_v41  ;;  %3380 = vmatmul.mubr.f32.gmra.mxu1 %v5305_v39  ;;  %v5314_v41 = vld [vmem:[#allocation24_spill] sm:$0xff] }
 0x205   : > { %3320 = vmatprep.mubr.f32.mxu0 %v5302_v15  ;;  %3382 = vmatprep.mubr.f32.mxu1 %v5306_v37 }
 0x208   : > { %3321 = vmatmul.mubr.f32.vlgmr.msra.gmra.mxu0 %v5303_v59  ;;  %3383 = vmatmul.mubr.f32.gmra.mxu1 %v5307_v20 }
 0x209   : > { %3323 = vmatprep.mubr.f32.mxu0 %v5304_v1  ;;  %3385 = vmatprep.mubr.f32.mxu1 %v5308_v40 }
 0x20c   : > { %3324 = vmatmul.mubr.f32.gmra.mxu0 %v5305_v39  ;;  %3386 = vmatmul.mubr.f32.gmra.mxu1 %v5309_v9 }
 0x20d   : > { %3326 = vmatprep.mubr.f32.mxu0 %v5306_v37  ;;  %3388 = vmatprep.mubr.f32.mxu1 %v5310_v43 }
 0x210   : > { %3327 = vmatmul.mubr.f32.gmra.mxu0 %v5307_v20  ;;  %3389 = vmatmul.mubr.f32.gmra.mxu1 %v5311_v47 }
 0x211   : > { %3329 = vmatprep.mubr.f32.mxu0 %v5308_v40  ;;  %3391 = vmatprep.mubr.f32.mxu1 %v5312_v57 }
 0x214   : > { %3330 = vmatmul.mubr.f32.gmra.mxu0 %v5309_v9  ;;  %3392 = vmatmul.mubr.f32.gmra.mxu1 %v5313_v36 }
 0x215   : > { %3332 = vmatprep.mubr.f32.mxu0 %v5310_v43  ;;  %3394 = vmatprep.mubr.f32.mxu1 %v4420_v14 }
 0x218   : > { %3333 = vmatmul.mubr.f32.gmra.mxu0 %v5311_v47  ;;  %3395 = vmatmul.mubr.f32.gmra.mxu1 %v4444_v27 }
 0x219   : > { %3335 = vmatprep.mubr.f32.mxu0 %v5312_v57  ;;  %3397 = vmatprep.mubr.f32.mxu1 %v4457_v42 }
 0x21c   : > { %3336 = vmatmul.mubr.f32.gmra.mxu0 %v5313_v36  ;;  %3398 = vmatmul.mubr.f32.gmra.mxu1 %v4473_v23 }
 0x21d   : > { %3338 = vmatprep.mubr.f32.mxu0 %v4420_v14  ;;  %3400 = vmatprep.mubr.f32.mxu1 %v4499_v11  ;;  %v5317_v14 = vld [vmem:[#allocation27_spill] sm:$0xff] }
 0x220   : > { %3339 = vmatmul.mubr.f32.gmra.mxu0 %v4444_v27  ;;  %3401 = vmatmul.mubr.f32.gmra.mxu1 %v5314_v41 }
 0x221   : > { %3341 = vmatprep.mubr.f32.mxu0 %v4457_v42  ;;  %3403 = vmatprep.mubr.f32.mxu1 %v5315_v62 }
 0x224   : > { %3342 = vmatmul.mubr.f32.gmra.mxu0 %v4473_v23  ;;  %3404 = vmatmul.mubr.f32.gmra.mxu1 %v5316_v6 }
 0x225   : > { %3344 = vmatprep.mubr.f32.mxu0 %v4499_v11  ;;  %3406 = vmatprep.mubr.f32.mxu1 %v4558_v34 }
 0x228   : > { %3345 = vmatmul.mubr.f32.gmra.mxu0 %v5314_v41  ;;  %3407 = vmatmul.mubr.f32.gmra.mxu1 %v5317_v14 }
 0x229   : > { %3347 = vmatprep.mubr.f32.mxu0 %v5315_v62  ;;  %3409 = vmatprep.mubr.f32.mxu1 %v4593_v58 }
 0x22c   : > { %3348 = vmatmul.mubr.f32.gmra.mxu0 %v5316_v6  ;;  %3410 = vmatmul.mubr.f32.gmra.mxu1 %v4600_v19  ;;  %v3154_v27 = vpop.f32.mrf.mxu1 }
 0x22d   : > { %3350 = vmatprep.mubr.f32.mxu0 %v4558_v34  ;;  %3412 = vmatprep.mubr.f32.mxu1 %v4628_v13 }
 0x22e   : > { %v1341_v42 = vpop.f32.mrf.mxu1 }
 0x230   : > { %3351 = vmatmul.mubr.f32.gmra.mxu0 %v5317_v14  ;;  %3413 = vmatmul.mubr.f32.gmra.mxu1 %v4649_v29  ;;  %v3157_v23 = vpop.f32.mrf.mxu1 }
 0x231   : > { %3353 = vmatprep.mubr.f32.mxu0 %v4593_v58  ;;  %3415 = vmatprep.mubr.f32.mxu1 %v4653_v49 }
 0x232   : > { %v1353_v11 = vpop.f32.mrf.mxu1 }
 0x234   : > { %3354 = vmatmul.mubr.f32.gmra.mxu0 %v4600_v19  ;;  %3416 = vmatmul.mubr.f32.gmra.mxu1 %v4666_v35 }
 0x235   : > { %3356 = vmatprep.mubr.f32.mxu0 %v4628_v13  ;;  %3418 = vmatprep.mubr.f32.mxu1 %v4686_v30 }
 0x236   : > { %v3160_v21 = vpop.f32.mrf.mxu1 }
 0x237   : > { %v3098_v34 = vpop.f32.mrf.mxu0 }
 0x238   : > { %v4906_v50 = vadd.f32 %v3154_v27, %v3098_v34  ;;  %3357 = vmatmul.mubr.f32.gmra.mxu0 %v4649_v29  ;;  %3419 = vmatmul.mubr.f32.gmra.mxu1 %v4693_v7  ;;  %v1365_v54 = vpop.f32.mrf.mxu1 }
 0x239   : > { %v940_v58 = vpop.f32.mrf.mxu0  ;;  %3359 = vmatprep.mubr.f32.mxu0 %v4653_v49  ;;  %3421 = vmatprep.mubr.f32.mxu1 %v4705_v0 }
 0x23a   : > { %v4912_v19 = vadd.f32 %v1341_v42, %v940_v58 }
 0x23b   : > { %v3101_v13 = vpop.f32.mrf.mxu0 }
 0x23c   : > { %3360 = vmatmul.mubr.f32.gmra.mxu0 %v4666_v35  ;;  %3422 = vmatmul.mubr.f32.gmra.mxu1 %v4721_v53  ;;  %v4917_v31 = vadd.f32 %v3157_v23, %v3101_v13 }
 0x23d   : > { %3362 = vmatprep.mubr.f32.mxu0 %v4686_v30  ;;  %v960_v16 = vpop.f32.mrf.mxu0 }
 0x23e   : > { %v3163_v29 = vpop.f32.mrf.mxu1  ;;  %v4919_v45 = vadd.f32 %v1353_v11, %v960_v16 }
 0x240   : > { %3363 = vmatmul.mubr.f32.gmra.mxu0 %v4693_v7  ;;  %v1377_v49 = vpop.f32.mrf.mxu1 }
 0x241   : > { %3365 = vmatprep.mubr.f32.mxu0 %v4705_v0  ;;  %v3104_v12 = vpop.f32.mrf.mxu0 }
 0x242   : > { %v4923_v22 = vadd.f32 %v3160_v21, %v3104_v12 }
 0x243   : > { %v980_v35 = vpop.f32.mrf.mxu0 }
 0x244   : > { %3366 = vmatmul.mubr.f32.gmra.mxu0 %v4721_v53  ;;  %v4926_v32 = vadd.f32 %v1365_v54, %v980_v35  ;;  %v3166_v30 = vpop.f32.mrf.mxu1 }
 0x246   : > { %v1389_v10 = vpop.f32.mrf.mxu1 }
 0x249   : > { %v3107_v38 = vpop.f32.mrf.mxu0 }
 0x24a   : > { %v4928_v51 = vadd.f32 %v3163_v29, %v3107_v38  ;;  %v3169_v28 = vpop.f32.mrf.mxu1 }
 0x24b   : > { %v1000_v26 = vpop.f32.mrf.mxu0 }
 0x24c   : > { %v4930_v61 = vadd.f32 %v1377_v49, %v1000_v26  ;;  %v1401_v7 = vpop.f32.mrf.mxu1 }
 0x250   : > { %v3110_v0 = vpop.f32.mrf.mxu0 }
 0x251   : > { %v4932_v5 = vadd.f32 %v3166_v30, %v3110_v0 }
 0x252   : > { %v3172_v8 = vpop.f32.mrf.mxu1  ;;  %v1020_v18 = vpop.f32.mrf.mxu0 }
 0x253   : > { %v4934_v33 = vadd.f32 %v1389_v10, %v1020_v18 }
 0x254   : > { %v1413_v53 = vpop.f32.mrf.mxu1 }
 0x255   : > { %v3113_v2 = vpop.f32.mrf.mxu0 }
 0x256   : > { %v4936_v44 = vadd.f32 %v3169_v28, %v3113_v2  ;;  %v3175_v3 = vpop.f32.mrf.mxu1 }
 0x257   : > { %v1040_v60 = vpop.f32.mrf.mxu0 }
 0x258   : > { %v4938_v17 = vadd.f32 %v1401_v7, %v1040_v60  ;;  %v1425_v52 = vpop.f32.mrf.mxu1 }
 0x25b   : > { %v3116_v48 = vpop.f32.mrf.mxu0 }
 0x25c   : > { %v4940_v56 = vadd.f32 %v3172_v8, %v3116_v48  ;;  %v3178_v63 = vpop.f32.mrf.mxu1 }
 0x25d   : > { %v1060_v55 = vpop.f32.mrf.mxu0 }
 0x25e   : > { %v4942_v25 = vadd.f32 %v1413_v53, %v1060_v55  ;;  %v1437_v24 = vpop.f32.mrf.mxu1 }
 0x25f   : > { %v3119_v4 = vpop.f32.mrf.mxu0 }
 0x260   : > { %v4944_v46 = vadd.f32 %v3175_v3, %v3119_v4 }
 0x261   : > { %v1080_v15 = vpop.f32.mrf.mxu0 }
 0x262   : > { %v3181_v59 = vpop.f32.mrf.mxu1  ;;  %v4946_v1 = vadd.f32 %v1425_v52, %v1080_v15 }
 0x264   : > { %v1449_v39 = vpop.f32.mrf.mxu1 }
 0x265   : > { %v3122_v37 = vpop.f32.mrf.mxu0 }
 0x266   : > { %v3184_v20 = vpop.f32.mrf.mxu1  ;;  %v4948_v40 = vadd.f32 %v3178_v63, %v3122_v37 }
 0x267   : > { %v1100_v9 = vpop.f32.mrf.mxu0 }
 0x268   : > { %v1461_v43 = vpop.f32.mrf.mxu1  ;;  %v4950_v47 = vadd.f32 %v1437_v24, %v1100_v9 }
 0x26a   : > { %v3125_v57 = vpop.f32.mrf.mxu0  ;;  %v3187_v36 = vpop.f32.mrf.mxu1 }
 0x26b   : > { %v4952_v41 = vadd.f32 %v3181_v59, %v3125_v57 }
 0x26c   : > { %v1120_v62 = vpop.f32.mrf.mxu0  ;;  %v1473_v6 = vpop.f32.mrf.mxu1 }
 0x26d   : > { %v4954_v14 = vadd.f32 %v1449_v39, %v1120_v62 }
 0x26e   : > { %v3128_v27 = vpop.f32.mrf.mxu0 }
 0x26f   : > { %v4956_v42 = vadd.f32 %v3184_v20, %v3128_v27  ;;  %v3190_v23 = vpop.f32.mrf.mxu1 }
 0x270   : > { %v1140_v11 = vpop.f32.mrf.mxu0 }
 0x271   : > { %v4958_v34 = vadd.f32 %v1461_v43, %v1140_v11  ;;  %v1485_v21 = vpop.f32.mrf.mxu1 }
 0x272   : > { %v3131_v58 = vpop.f32.mrf.mxu0 }
 0x273   : > { %v4960_v54 = vadd.f32 %v3187_v36, %v3131_v58  ;;  %v3193_v13 = vpop.f32.mrf.mxu1 }
 0x274   : > { %v1160_v29 = vpop.f32.mrf.mxu0 }
 0x275   : > { %v4962_v16 = vadd.f32 %v1473_v6, %v1160_v29  ;;  %v1497_v49 = vpop.f32.mrf.mxu1 }
 0x277   : > { %v3196_v35 = vpop.f32.mrf.mxu1 }
 0x278   : > { %v3134_v12 = vpop.f32.mrf.mxu0 }
 0x279   : > { %v4964_v30 = vadd.f32 %v3190_v23, %v3134_v12  ;;  %v1509_v38 = vpop.f32.mrf.mxu1 }
 0x27a   : > { %v1180_v10 = vpop.f32.mrf.mxu0 }
 0x27b   : > { %v4966_v28 = vadd.f32 %v1485_v21, %v1180_v10  ;;  %v3199_v7 = vpop.f32.mrf.mxu1 }
 0x27c   : > { %v3137_v26 = vpop.f32.mrf.mxu0 }
 0x27d   : > { %v4968_v0 = vadd.f32 %v3193_v13, %v3137_v26  ;;  %v1521_v18 = vpop.f32.mrf.mxu1 }
 0x27e   : > { %v1200_v8 = vpop.f32.mrf.mxu0 }
 0x27f   : > { %v4970_v53 = vadd.f32 %v1497_v49, %v1200_v8  ;;  %v3266_v3 = vpop.f32.mrf.mxu1 }
 0x280   : > { %v3140_v2 = vpop.f32.mrf.mxu0 }
 0x281   : > { %v4972_v60 = vadd.f32 %v3196_v35, %v3140_v2  ;;  %v4974_v48 = vpop.f32.mrf.mxu1 }
 0x282   : > { %v1220_v52 = vpop.f32.mrf.mxu0 }
 0x283   : > { %v4976_v63 = vadd.f32 %v1509_v38, %v1220_v52  ;;  %v3269_v24 = vpop.f32.mrf.mxu1 }
 0x284   : > { %v3143_v55 = vpop.f32.mrf.mxu0 }
 0x285   : > { %v4978_v4 = vadd.f32 %v3199_v7, %v3143_v55  ;;  %v1917_v59 = vpop.f32.mrf.mxu1 }
 0x286   : > { %v1240_v15 = vpop.f32.mrf.mxu0 }
 0x287   : > { %v4980_v39 = vadd.f32 %v1521_v18, %v1240_v15  ;;  %v3272_v20 = vpop.f32.mrf.mxu1 }
 0x288   : > { %v3210_v37 = vpop.f32.mrf.mxu0 }
 0x289   : > { %v1615_v9 = vadd.f32 %v3210_v37, %v4906_v50  ;;  %v1933_v57 = vpop.f32.mrf.mxu1 }
 0x28a   : > { %v4983_v43 = vpop.f32.mrf.mxu0 }
 0x28b   : > { %v4985_v36 = vadd.f32 %v3266_v3, %v1615_v9  ;;  %v3275_v6 = vpop.f32.mrf.mxu1 }
 0x28c   : > { %v3213_v62 = vpop.f32.mrf.mxu0 }
 0x28d   : > { %v1629_v27 = vadd.f32 %v3213_v62, %v4917_v31  ;;  %v1949_v11 = vpop.f32.mrf.mxu1 }
 0x28e   : > { %v1621_v23 = vpop.f32.mrf.mxu0 }
 0x28f   : > { %v1622_v21 = vadd.f32 %v1621_v23, %v4919_v45  ;;  %v4989_v58 = vadd.f32 %v3269_v24, %v1629_v27 }
 0x290   : > { %v3216_v13 = vpop.f32.mrf.mxu0  ;;  %v3278_v29 = vpop.f32.mrf.mxu1 }
 0x291   : > { %v1643_v49 = vadd.f32 %v3216_v13, %v4923_v22  ;;  %v4992_v50 = vadd.f32 %v1917_v59, %v1622_v21 }
 0x292   : > { %v1635_v12 = vpop.f32.mrf.mxu0  ;;  %v1965_v35 = vpop.f32.mrf.mxu1 }
 0x293   : > { %v1636_v10 = vadd.f32 %v1635_v12, %v4926_v32  ;;  %v4995_v38 = vadd.f32 %v3272_v20, %v1643_v49 }
 0x294   : > { %v3219_v26 = vpop.f32.mrf.mxu0  ;;  %v3281_v31 = vpop.f32.mrf.mxu1 }
 0x295   : > { %v1657_v7 = vadd.f32 %v3219_v26, %v4928_v51  ;;  %v4998_v8 = vadd.f32 %v1933_v57, %v1636_v10 }
 0x296   : > { %v1649_v45 = vpop.f32.mrf.mxu0  ;;  %v1981_v18 = vpop.f32.mrf.mxu1 }
 0x297   : > { %v1650_v2 = vadd.f32 %v1649_v45, %v4930_v61  ;;  %v5001_v3 = vadd.f32 %v3275_v6, %v1657_v7 }
 0x298   : > { %v3222_v22 = vpop.f32.mrf.mxu0  ;;  %v3284_v52 = vpop.f32.mrf.mxu1 }
 0x299   : > { %v1671_v55 = vadd.f32 %v3222_v22, %v4932_v5  ;;  %v5004_v24 = vadd.f32 %v1949_v11, %v1650_v2 }
 0x29a   : > { %v1663_v32 = vpop.f32.mrf.mxu0  ;;  %v1997_v15 = vpop.f32.mrf.mxu1 }
 0x29b   : > { %v1664_v59 = vadd.f32 %v1663_v32, %v4934_v33  ;;  %v5007_v37 = vadd.f32 %v3278_v29, %v1671_v55 }
 0x29c   : > { %v3225_v51 = vpop.f32.mrf.mxu0  ;;  %v3287_v20 = vpop.f32.mrf.mxu1 }
 0x29d   : > { %v1685_v9 = vadd.f32 %v3225_v51, %v4936_v44  ;;  %v5010_v57 = vadd.f32 %v1965_v35, %v1664_v59 }
 0x29e   : > { %v1677_v61 = vpop.f32.mrf.mxu0  ;;  %v2013_v62 = vpop.f32.mrf.mxu1 }
 0x29f   : > { %v1678_v6 = vadd.f32 %v1677_v61, %v4938_v17  ;;  %v5013_v27 = vadd.f32 %v3281_v31, %v1685_v9 }
 0x2a0   : > { %v3228_v5 = vpop.f32.mrf.mxu0  ;;  %v3290_v23 = vpop.f32.mrf.mxu1 }
 0x2a1   : > { %v1699_v11 = vadd.f32 %v3228_v5, %v4940_v56  ;;  %v5016_v21 = vadd.f32 %v1981_v18, %v1678_v6 }
 0x2a2   : > { %v1691_v33 = vpop.f32.mrf.mxu0  ;;  %v5018_v13 = vpop.f32.mrf.mxu1 }
 0x2a3   : > { %v1692_v29 = vadd.f32 %v1691_v33, %v4942_v25  ;;  %v5021_v44 = vadd.f32 %v3284_v52, %v1699_v11 }
 0x2a4   : > { %v3231_v49 = vpop.f32.mrf.mxu0  ;;  %v3293_v12 = vpop.f32.mrf.mxu1 }
 0x2a5   : > { %v1713_v35 = vadd.f32 %v3231_v49, %v4944_v46  ;;  %v5024_v17 = vadd.f32 %v1997_v15, %v1692_v29 }
 0x2a6   : > { %v1705_v10 = vpop.f32.mrf.mxu0  ;;  %v2045_v26 = vpop.f32.mrf.mxu1 }
 0x2a7   : > { %v1706_v31 = vadd.f32 %v1705_v10, %v4946_v1  ;;  %v5027_v56 = vadd.f32 %v3287_v20, %v1713_v35 }
 0x2a8   : > { %v3234_v7 = vpop.f32.mrf.mxu0  ;;  %v3296_v45 = vpop.f32.mrf.mxu1 }
 0x2a9   : > { %v1727_v18 = vadd.f32 %v3234_v7, %v4948_v40  ;;  %v5030_v2 = vadd.f32 %v2013_v62, %v1706_v31 }
 0x2aa   : > { %v5032_v25 = vpop.f32.mrf.mxu0  ;;  %v2061_v22 = vpop.f32.mrf.mxu1 }
 0x2ab   : > { %v5034_v52 = vadd.f32 %v3290_v23, %v1727_v18 }
 0x2ac   : > { %v3237_v46 = vpop.f32.mrf.mxu0  ;;  %v3299_v55 = vpop.f32.mrf.mxu1 }
 0x2ad   : > { %v1741_v32 = vadd.f32 %v3237_v46, %v4952_v41 }
 0x2ae   : > { %v1733_v15 = vpop.f32.mrf.mxu0  ;;  %v2077_v59 = vpop.f32.mrf.mxu1 }
 0x2af   : > { %v1734_v1 = vadd.f32 %v1733_v15, %v4954_v14  ;;  %v5038_v51 = vadd.f32 %v3293_v12, %v1741_v32 }
 0x2b0   : > { %v3240_v20 = vpop.f32.mrf.mxu0  ;;  %v3302_v9 = vpop.f32.mrf.mxu1 }
 0x2b1   : > { %v1755_v40 = vadd.f32 %v3240_v20, %v4956_v42  ;;  %v5041_v61 = vadd.f32 %v2045_v26, %v1734_v1 }
 0x2b2   : > { %v1747_v62 = vpop.f32.mrf.mxu0  ;;  %v2093_v6 = vpop.f32.mrf.mxu1 }
 0x2b3   : > { %v1748_v5 = vadd.f32 %v1747_v62, %v4958_v34  ;;  %v5044_v23 = vadd.f32 %v3296_v45, %v1755_v40 }
 0x2b4   : > { %v3243_v11 = vpop.f32.mrf.mxu0  ;;  %v3305_v41 = vpop.f32.mrf.mxu1 }
 0x2b5   : > { %v1769_v33 = vadd.f32 %v3243_v11, %v4960_v54  ;;  %v5047_v29 = vadd.f32 %v2061_v22, %v1748_v5  ;;  %v1608_v11 = vadd.f32 %v4983_v43, %v4912_v19 }
 0x2b6   : > { %v1761_v14 = vpop.f32.mrf.mxu0  ;;  %v2109_v49 = vpop.f32.mrf.mxu1 }
 0x2b7   : > { %v1762_v12 = vadd.f32 %v1761_v14, %v4962_v16  ;;  %v5050_v35 = vadd.f32 %v3299_v55, %v1769_v33 }
 0x2b8   : > { %v3246_v42 = vpop.f32.mrf.mxu0  ;;  %v3308_v10 = vpop.f32.mrf.mxu1 }
 0x2b9   : > { %v1783_v26 = vadd.f32 %v3246_v42, %v4964_v30  ;;  %v5053_v31 = vadd.f32 %v2077_v59, %v1762_v12 }
 0x2ba   : > { %v1775_v34 = vpop.f32.mrf.mxu0  ;;  %v2125_v7 = vpop.f32.mrf.mxu1 }
 0x2bb   : > { %v1776_v45 = vadd.f32 %v1775_v34, %v4966_v28  ;;  %v5056_v18 = vadd.f32 %v3302_v9, %v1783_v26 }
 0x2bc   : > { %v3249_v54 = vpop.f32.mrf.mxu0  ;;  %v3311_v22 = vpop.f32.mrf.mxu1 }
 0x2bd   : > { %v1797_v46 = vadd.f32 %v3249_v54, %v4968_v0  ;;  %v5059_v32 = vadd.f32 %v2093_v6, %v1776_v45 }
 0x2be   : > { %v1789_v16 = vpop.f32.mrf.mxu0  ;;  %v2141_v55 = vpop.f32.mrf.mxu1 }
 0x2bf   : > { %v1790_v15 = vadd.f32 %v1789_v16, %v4970_v53  ;;  %v5062_v1 = vadd.f32 %v3305_v41, %v1797_v46 }
 0x2c0   : > { %v3252_v30 = vpop.f32.mrf.mxu0  ;;  %v3378_v59 = vpop.f32.mrf.mxu1 }
 0x2c1   : > { %v1811_v20 = vadd.f32 %v3252_v30, %v4972_v60  ;;  %v5065_v40 = vadd.f32 %v2109_v49, %v1790_v15 }
 0x2c2   : > { %v1803_v28 = vpop.f32.mrf.mxu0  ;;  %v2493_v9 = vpop.f32.mrf.mxu1 }
 0x2c3   : > { %v1804_v62 = vadd.f32 %v1803_v28, %v4976_v63  ;;  %v5068_v5 = vadd.f32 %v3308_v10, %v1811_v20  ;;  %v1902_v63 = vadd.f32 %v4974_v48, %v1608_v11 }
 0x2c4   : > { %v3255_v0 = vpop.f32.mrf.mxu0  ;;  %v3381_v6 = vpop.f32.mrf.mxu1 }
 0x2c5   : > { %v1825_v53 = vadd.f32 %v3255_v0, %v4978_v4  ;;  %v5073_v41 = vadd.f32 %v2125_v7, %v1804_v62 }
 0x2c6   : > { %v1817_v33 = vpop.f32.mrf.mxu0  ;;  %v2505_v14 = vpop.f32.mrf.mxu1 }
 0x2c7   : > { %v1818_v60 = vadd.f32 %v1817_v33, %v4980_v39  ;;  %v5076_v49 = vadd.f32 %v3311_v22, %v1825_v53 }
 0x2c8   : > { %v3322_v12 = vpop.f32.mrf.mxu0  ;;  %v3384_v42 = vpop.f32.mrf.mxu1 }
 0x2c9   : > { %v5079_v10 = vadd.f32 %v2141_v55, %v1818_v60  ;;  %v2239_v4 = vadd.f32 %v3322_v12, %v4985_v36 }
 0x2ca   : > { %v2232_v26 = vpop.f32.mrf.mxu0  ;;  %v2517_v34 = vpop.f32.mrf.mxu1 }
 0x2cb   : > { %v2233_v45 = vadd.f32 %v2232_v26, %v1902_v63  ;;  %v2500_v16 = vadd.f32 %v3378_v59, %v2239_v4 }
 0x2cc   : > { %v3325_v19 = vpop.f32.mrf.mxu0  ;;  %v3387_v43 = vpop.f32.mrf.mxu1 }
 0x2cd   : > { %v2494_v7 = vadd.f32 %v2493_v9, %v2233_v45  ;;  %v2251_v28 = vadd.f32 %v3325_v19, %v4989_v58 }
 0x2ce   : > { %v2244_v54 = vpop.f32.mrf.mxu0  ;;  %v2529_v46 = vpop.f32.mrf.mxu1 }
 0x2cf   : > { %2683 = vxpose.xlu0.b32.start [1/16] (narrow) %v2494_v7, 8  ;;  %v2245_v15 = vadd.f32 %v2244_v54, %v4992_v50  ;;  %v2512_v53 = vadd.f32 %v3381_v6, %v2251_v28  ;;  %v1720_v7 = vadd.f32 %v5032_v25, %v4950_v47 }
 0x2d0   : > { %v3328_v39 = vpop.f32.mrf.mxu0  ;;  %v3390_v22 = vpop.f32.mrf.mxu1 }
 0x2d1   : > { %v2506_v62 = vadd.f32 %v2505_v14, %v2245_v15  ;;  %v2263_v12 = vadd.f32 %v3328_v39, %v4995_v38 }
 0x2d2   : > { %v2256_v30 = vpop.f32.mrf.mxu0  ;;  %v2541_v48 = vpop.f32.mrf.mxu1 }
 0x2d3   : > { %2684 = vxpose.xlu0.b32.cont [2/16] (narrow) %v2500_v16, 8  ;;  %v2257_v59 = vadd.f32 %v2256_v30, %v4998_v8  ;;  %v2524_v45 = vadd.f32 %v3384_v42, %v2263_v12 }
 0x2d4   : > { %v3331_v55 = vpop.f32.mrf.mxu0  ;;  %v5083_v20 = vpop.f32.mrf.mxu1 }
 0x2d5   : > { %v2518_v63 = vadd.f32 %v2517_v34, %v2257_v59  ;;  %v2275_v38 = vadd.f32 %v3331_v55, %v5001_v3 }
 0x2d6   : > { %v2268_v0 = vpop.f32.mrf.mxu0  ;;  %v2553_v36 = vpop.f32.mrf.mxu1 }
 0x2d7   : > { %2685 = vxpose.xlu0.b32.cont [3/16] (narrow) %v2506_v62, 8  ;;  %v2269_v19 = vadd.f32 %v2268_v0, %v5004_v24  ;;  %v2536_v15 = vadd.f32 %v3387_v43, %v2275_v38  ;;  %v2030_v24 = vadd.f32 %v5018_v13, %v1720_v7 }
 0x2d8   : > { %v3334_v9 = vpop.f32.mrf.mxu0  ;;  %v5086_v11 = vpop.f32.mrf.mxu1 }
 0x2d9   : > { %v2530_v34 = vadd.f32 %v2529_v46, %v2269_v19 }
 0x2da   : > { %v2280_v33 = vpop.f32.mrf.mxu0  ;;  %v2565_v50 = vpop.f32.mrf.mxu1 }
 0x2db   : > { %2686 = vxpose.xlu0.b32.cont [4/16] (narrow) %v2512_v53, 8  ;;  %v2281_v42 = vadd.f32 %v2280_v33, %v5010_v57  ;;  %v2287_v53 = vadd.f32 %v3334_v9, %v5007_v37 }
 0x2dc   : > { %v3337_v60 = vpop.f32.mrf.mxu0  ;;  %v5090_v58 = vpop.f32.mrf.mxu1 }
 0x2dd   : > { %v2542_v47 = vadd.f32 %v2541_v48, %v2281_v42  ;;  %v2548_v43 = vadd.f32 %v3390_v22, %v2287_v53  ;;  %v2299_v37 = vadd.f32 %v3337_v60, %v5013_v27 }
 0x2de   : > { %v2292_v26 = vpop.f32.mrf.mxu0  ;;  %v5093_v6 = vpop.f32.mrf.mxu1 }
 0x2df   : > { %2687 = vxpose.xlu0.b32.cont [5/16] (narrow) %v2518_v63, 8  ;;  %v2293_v57 = vadd.f32 %v2292_v26, %v5016_v21  ;;  %v2560_v22 = vadd.f32 %v5083_v20, %v2299_v37 }
 0x2e0   : > { %v3340_v14 = vpop.f32.mrf.mxu0  ;;  %v3402_v39 = vpop.f32.mrf.mxu1 }
 0x2e1   : > { %v2554_v48 = vadd.f32 %v2553_v36, %v2293_v57  ;;  %v2311_v27 = vadd.f32 %v3340_v14, %v5021_v44 }
 0x2e2   : > { %v2304_v4 = vpop.f32.mrf.mxu0  ;;  %v2589_v62 = vpop.f32.mrf.mxu1 }
 0x2e3   : > { %2688 = vxpose.xlu0.b32.cont [6/16] (narrow) %v2524_v45, 8  ;;  %v2305_v21 = vadd.f32 %v2304_v4, %v5024_v17  ;;  %v2572_v20 = vadd.f32 %v5086_v11, %v2311_v27 }
 0x2e4   : > { %v5095_v8 = vpop.f32.mrf.mxu0  ;;  %v3405_v55 = vpop.f32.mrf.mxu1 }
 0x2e5   : > { %v2566_v36 = vadd.f32 %v2565_v50, %v2305_v21  ;;  %v2323_v44 = vadd.f32 %v5095_v8, %v5027_v56 }
 0x2e6   : > { %v2316_v54 = vpop.f32.mrf.mxu0  ;;  %v2601_v12 = vpop.f32.mrf.mxu1 }
 0x2e7   : > { %2689 = vxpose.xlu0.b32.cont [7/16] (narrow) %v2530_v34, 8  ;;  %v2317_v17 = vadd.f32 %v2316_v54, %v5030_v2  ;;  %v2584_v2 = vadd.f32 %v5090_v58, %v2323_v44 }
 0x2e8   : > { %v3346_v16 = vpop.f32.mrf.mxu0  ;;  %v3408_v45 = vpop.f32.mrf.mxu1 }
 0x2e9   : > { %v2335_v3 = vadd.f32 %v3346_v16, %v5034_v52 }
 0x2ea   : > { %v2328_v30 = vpop.f32.mrf.mxu0  ;;  %v2613_v7 = vpop.f32.mrf.mxu1 }
 0x2eb   : > { %v2329_v28 = vadd.f32 %v2328_v30, %v2030_v24  ;;  %2690 = vxpose.xlu0.b32.cont [8/16] (narrow) %v2536_v15, 8  ;;  %v2596_v59 = vadd.f32 %v3402_v39, %v2335_v3 }
 0x2ec   : > { %v3349_v0 = vpop.f32.mrf.mxu0  ;;  %v3411_v34 = vpop.f32.mrf.mxu1 }
 0x2ed   : > { %v2590_v25 = vadd.f32 %v2589_v62, %v2329_v28  ;;  %v2347_v52 = vadd.f32 %v3349_v0, %v5038_v51 }
 0x2ee   : > { %v2340_v46 = vpop.f32.mrf.mxu0  ;;  %v2625_v16 = vpop.f32.mrf.mxu1 }
 0x2ef   : > { %2715 = vxpose.xlu1.b32.start [1/16] (narrow) %v2590_v25, 8  ;;  %2691 = vxpose.xlu0.b32.cont [9/16] (narrow) %v2542_v47, 8  ;;  %v2341_v13 = vadd.f32 %v2340_v46, %v5041_v61  ;;  %v2608_v26 = vadd.f32 %v3405_v55, %v2347_v52 }
 0x2f0   : > { %v3352_v33 = vpop.f32.mrf.mxu0  ;;  %v3414_v11 = vpop.f32.mrf.mxu1 }
 0x2f1   : > { %v2602_v9 = vadd.f32 %v2601_v12, %v2341_v13  ;;  %v2359_v51 = vadd.f32 %v3352_v33, %v5044_v23  ;;  %v2578_v23 = vadd.f32 %v5093_v6, %v2317_v17 }
 0x2f2   : > { %v2352_v63 = vpop.f32.mrf.mxu0  ;;  %v2637_v24 = vpop.f32.mrf.mxu1 }
 0x2f3   : > { %2716 = vxpose.xlu1.b32.cont [2/16] (narrow) %v2596_v59, 8  ;;  %2692 = vxpose.xlu0.b32.cont [10/16] (narrow) %v2548_v43, 8  ;;  %v2353_v61 = vadd.f32 %v2352_v63, %v5047_v29  ;;  %v2620_v4 = vadd.f32 %v3408_v45, %v2359_v51 }
 0x2f4   : > { %v3355_v19 = vpop.f32.mrf.mxu0 }
 0x2f5   : > { %v2614_v60 = vadd.f32 %v2613_v7, %v2353_v61  ;;  %v2371_v50 = vadd.f32 %v3355_v19, %v5050_v35  ;;  %v3417_v35 = vpop.f32.mrf.mxu1 }
 0x2f6   : > { %v2364_v38 = vpop.f32.mrf.mxu0 }
 0x2f7   : > { %2717 = vxpose.xlu1.b32.cont [3/16] (narrow) %v2602_v9, 8  ;;  %2693 = vxpose.xlu0.b32.cont [11/16] (narrow) %v2554_v48, 8  ;;  %v2365_v29 = vadd.f32 %v2364_v38, %v5053_v31  ;;  %v2632_v54 = vadd.f32 %v3411_v34, %v2371_v50  ;;  %v2649_v0 = vpop.f32.mrf.mxu1 }
 0x2f8   : > { %v3358_v39 = vpop.f32.mrf.mxu0 }
 0x2f9   : > { %v2626_v14 = vadd.f32 %v2625_v16, %v2365_v29  ;;  %v2383_v56 = vadd.f32 %v3358_v39, %v5056_v18  ;;  %v3420_v47 = vpop.f32.mrf.mxu1 }
 0x2fa   : > { %v2376_v15 = vpop.f32.mrf.mxu0 }
 0x2fb   : > { %2718 = vxpose.xlu1.b32.cont [4/16] (narrow) %v2608_v26, 8  ;;  %2694 = vxpose.xlu0.b32.cont [12/16] (narrow) %v2560_v22, 8  ;;  %v2377_v31 = vadd.f32 %v2376_v15, %v5059_v32  ;;  %v2644_v30 = vadd.f32 %v3414_v11, %v2383_v56  ;;  %v2661_v46 = vpop.f32.mrf.mxu1 }
 0x2fc   : > { %v3361_v42 = vpop.f32.mrf.mxu0 }
 0x2fd   : > { %v2638_v8 = vadd.f32 %v2637_v24, %v2377_v31  ;;  %v2395_v58 = vadd.f32 %v3361_v42, %v5062_v1  ;;  %v3423_v57 = vpop.f32.mrf.mxu1 }
 0x2fe   : > { %v2388_v6 = vpop.f32.mrf.mxu0 }
 0x2ff   : > { %2719 = vxpose.xlu1.b32.cont [5/16] (narrow) %v2614_v60, 8  ;;  %2695 = vxpose.xlu0.b32.cont [13/16] (narrow) %v2566_v36, 8  ;;  %v2389_v28 = vadd.f32 %v2388_v6, %v5065_v40  ;;  %v2656_v3 = vadd.f32 %v3417_v35, %v2395_v58  ;;  %v2673_v13 = vpop.f32.mrf.mxu1 }
 0x300   : > { %v3364_v62 = vpop.f32.mrf.mxu0 }
 0x301   : > { %v2650_v53 = vadd.f32 %v2649_v0, %v2389_v28  ;;  %v2407_v55 = vadd.f32 %v3364_v62, %v5068_v5 }
 0x302   : > { %v2400_v32 = vpop.f32.mrf.mxu0 }
 0x303   : > { %2720 = vxpose.xlu1.b32.cont [6/16] (narrow) %v2620_v4, 8  ;;  %2696 = vxpose.xlu0.b32.cont [14/16] (narrow) %v2572_v20, 8  ;;  %v2401_v25 = vadd.f32 %v2400_v32, %v5073_v41  ;;  %v2668_v59 = vadd.f32 %v3420_v47, %v2407_v55 }
 0x304   : > { %v3367_v18 = vpop.f32.mrf.mxu0 }
 0x305   : > { %v2662_v40 = vadd.f32 %v2661_v46, %v2401_v25  ;;  %v2419_v33 = vadd.f32 %v3367_v18, %v5076_v49 }
 0x306   : > { %v2412_v43 = vpop.f32.mrf.mxu0 }
 0x307   : > { %2721 = vxpose.xlu1.b32.cont [7/16] (narrow) %v2626_v14, 8  ;;  %2697 = vxpose.xlu0.b32.cont [15/16] (narrow) %v2578_v23, 8  ;;  %v2413_v1 = vadd.f32 %v2412_v43, %v5079_v10  ;;  %v2680_v12 = vadd.f32 %v3423_v57, %v2419_v33 }
 0x309   : > { %v2674_v41 = vadd.f32 %v2673_v13, %v2413_v1 }
 0x30b   : > { %2722 = vxpose.xlu1.b32.cont [8/16] (narrow) %v2632_v54, 8  ;;  %2698 = vxpose.xlu0.b32.end [16/16] (narrow) %v2584_v2, 8 }
 0x30f   : > { %2723 = vxpose.xlu1.b32.cont [9/16] (narrow) %v2638_v8, 8 }
 0x313   : > { %2724 = vxpose.xlu1.b32.cont [10/16] (narrow) %v2644_v30, 8 }
 0x317   : > { %2725 = vxpose.xlu1.b32.cont [11/16] (narrow) %v2650_v53, 8 }
 0x31b   : > { %2726 = vxpose.xlu1.b32.cont [12/16] (narrow) %v2656_v3, 8 }
 0x31f   : > { %2727 = vxpose.xlu1.b32.cont [13/16] (narrow) %v2662_v40, 8 }
 0x323   : > { %2728 = vxpose.xlu1.b32.cont [14/16] (narrow) %v2668_v59, 8 }
 0x327   : > { %2729 = vxpose.xlu1.b32.cont [15/16] (narrow) %v2674_v41, 8 }
 0x32b   : > { %2730 = vxpose.xlu1.b32.end [16/16] (narrow) %v2680_v12, 8 }
 0x34b   : > { %v2699_v5 = vpop.trf.xlu0 }
 0x36b   : > { %v2731_v37 = vpop.trf.xlu1 }
 0x36c   : > { %v2749_v48 = vcombine.low %v2699_v5, %v2731_v37 }
 0x36e   : > { %2751 = vst [vmem:[%s234_s9] sm:$0xff] %v2749_v48 }
 0x36f   : > { %3593 = shalt.err (!%p3590_p6)
}
 0x370   : > { %s3594_s24 = scalar_lea.hbm %s2767_s12, 128  ;;  %s3598_s25 = scalar_lea.hbm %s5174_s4, 256 }
 0x371   : > { %p3595_p7 = scmp.ne.s32.totalorder %s2767_s12, %s3594_s24  ;;  %p3599_p13 = scmp.lt.s32.totalorder %s2767_s12, %s5174_s4 }
 0x372   : > { %p3600_p2 = scmp.lt.s32.totalorder %s3598_s25, %s3594_s24 }
 0x373   : > { %p3596_p10 = pnand %p3595_p7, %p3742_p9 }
 0x374   : > { %p3601_p8 = por %p3600_p2, %p3599_p13 }
 0x375   : > { %p3597_p4 = pneg %p3596_p10 }
 0x377   : > { %p3602_p12 = pnand %p3601_p8, %p3597_p4 }
 0x379   : > { %3605 = shalt.err (!%p3602_p12)
}
 0x37a   : > { %3426 = dma.vmem_to_hbm [thread:$0]  (%p3742_p9), %s2770_s27, 128, %s2767_s12, %s2753_s13  }
 0x37b PF: > { %s2781_s8 = sand.u32 1, %s3640_s15   ;;  %p5318_p0 = scmp.ge.s32.totalorder %s3660_s20, 2 }
 0x37c   : > { %s2782_s9 = scalar_lea.sflag [#allocation4], %s2781_s8 }
 0x37d   : > { %p3433_p1 = pnand %p5318_p0, %p3749_p11 }
 0x37f   : > { %p3434_p3 = pneg %p3433_p1 }
 0x381   : > { %3635 = dma.done.wait (%p3434_p3), %s2782_s9, 128  }
 0x382   : > { %3637 = vsyncadd (%p3434_p3), %s2782_s9, 4294967168  ;;  %s20_s20 = sadd.s32 1, %s3660_s20   ;;  %s5319_s15 = smov %s3644_s16 }
 0x383   : > { %p17_p5 = scmp.ge.s32.totalorder %s20_s20, 4   ;;  %s5320_s16 = smov %s3648_s17 }
 0x384   : > { %s5321_s17 = smov %s3747_s29  ;;  %s5322_s18 = smov %s3656_s19 }
 0x385   : > { %s5323_s19 = smov %s5325_s23  ;;  %19 = sbr.rel (!%p17_p5) target bundleno = 6 (0x6), region = 81 }
 0x38a   :  { %2787 = vsyncpa [#allocation3], 1 }
 0x38b   :  { %2789 = vsyncpa [#allocation3 + $0x1], 1 }
 0x38c   :  { %2790 = vsyncpa [#allocation4], 1 }
 0x38d   :  { %2792 = vsyncpa [#allocation4 + $0x1], 1 }

</bundles_post_ra>
